<compile_context>
chip_gen: v7x
topology: tpu7x:2x2x1
jax: 0.10.0
libtpu: 0.0.40
codegen_flags: <defaults>
</compile_context>

<pallas_src>
import math
from functools import partial

import jax
import jax.numpy as jnp
from jax.experimental import pallas as pl
from jax.experimental.pallas import tpu as pltpu

EMBED_DIM = 128   # module default
HIDDEN = 128
BF16 = jnp.bfloat16


def _round_up(x, m):
    return ((x + m - 1) // m) * m


def _query_vmem_bytes():
    try:
        info = pltpu.get_tpu_info()
        for attr in ("vmem_capacity_bytes", "vmem_bytes", "vmem_size_bytes"):
            v = getattr(info, attr, None)
            if v:
                return int(v)
    except Exception:
        pass
    return 64 << 20  # conservative default: v7x physical VMEM


_VMEM_PHYS = _query_vmem_bytes()
_VMEM_LIMIT = int(min((_VMEM_PHYS * 3) // 4, 100 << 20))

_POW2_TILES = (4096, 2048, 1024, 512, 256, 128)


def _derive_tile_caps():
    """Largest (tm, tk) whose per-step VMEM footprint fits the budget."""
    budget = int(_VMEM_LIMIT * 0.8)          # leave headroom for compiler temps
    tk_cap = 2048
    # per-step fixed bytes: x_src double buffer + weights/bias/misc
    fixed = 2 * tk_cap * EMBED_DIM * 2 + (512 << 10)
    # per-dst-row bytes: A int8 dbl-buf + x_self dbl-buf + out dbl-buf + aggr/deg scratch
    per_tm = 2 * tk_cap + 2 * EMBED_DIM * 2 + 2 * HIDDEN * 2 + EMBED_DIM * 4 + 4
    tm_cap = max(256, (budget - fixed) // per_tm)
    tm_cap = min(4096, tm_cap)
    return tm_cap, tk_cap


def _choose_tiles(n):
    """Pad the node count and pick power-of-two (tm, tk) that divide n_pad."""
    n_pad0 = _round_up(max(n, 1), 128)
    tm_cap, tk_cap = _derive_tile_caps()

    def pick(cap):
        # >= 2 tiles per axis when the graph allows it (keeps the DMA/compute
        # pipeline and both v7x TensorCores busy), never below 128.
        target = max(128, min(cap, n_pad0 // 2))
        for t in _POW2_TILES:
            if t <= target:
                return t
        return 128

    tm, tk = pick(tm_cap), pick(tk_cap)
    n_pad = _round_up(n_pad0, max(tm, tk))
    return n_pad, tm, tk


# --------------------------- Pallas kernels (hot path) ---------------------------

def _sage_kernel(a_ref, keep_ref, x_src_ref, x_self_ref, wl_ref, wr_ref, b_ref,
                 o_ref, aggr_ref, deg_ref):
    """K-tiled, normalization-fused SAGEConv + ReLU.

    a_ref:      (tm, tk)  int8   raw edge counts A_base[dst, src] tile (i, k)
    keep_ref:   (1, tk)   f32    node keep-mask (src side) for this k tile
    x_src_ref:  (tk, F)   bf16   source-node features (dropped rows already 0)
    x_self_ref: (tm, F)   bf16   self features for this dst-row tile
    wl_ref:     (F, H)    bf16   lin_l^T (neighbor term, has bias)
    wr_ref:     (F, H)    bf16   lin_r^T (root term)
    b_ref:      (1, H)    f32
    o_ref:      (tm, H)   bf16
    aggr_ref:   (tm, F)   f32    scratch: un-normalized neighbor sum
    deg_ref:    (tm, 1)   f32    scratch: masked in-degree
    """
    k = pl.program_id(1)

    @pl.when(k == 0)
    def _init():
        aggr_ref[...] = jnp.zeros_like(aggr_ref)
        deg_ref[...] = jnp.zeros_like(deg_ref)

    a = a_ref[...].astype(jnp.float32)                 # int8 -> f32 widen (VPU)
    # X rows of dropped/padded src nodes are exactly zero, so no column mask is
    # needed for the neighbor sum itself.
    aggr_ref[...] += jnp.dot(a.astype(BF16), x_src_ref[...],
                             preferred_element_type=jnp.float32)
    # masked in-degree for the mean (keep-mask excludes edges from dropped srcs)
    deg_ref[...] += jnp.sum(a * keep_ref[...], axis=-1, keepdims=True)

    @pl.when(k == pl.num_programs(1) - 1)
    def _finalize():
        inv = pl.reciprocal(jnp.maximum(deg_ref[...], 1.0), approx=True)  # EUP
        mean_aggr = (aggr_ref[...] * inv).astype(BF16)
        out = jnp.dot(mean_aggr, wl_ref[...], preferred_element_type=jnp.float32)
        out += jnp.dot(x_self_ref[...], wr_ref[...], preferred_element_type=jnp.float32)
        out += b_ref[...]                               # f32 epilogue (v5e-safe)
        # Padded / pooled-out dst rows come out as relu(bias) != 0; downstream
        # topk_pool / mean_pool masking relies on masking them again.
        o_ref[...] = jnp.maximum(out, 0.0).astype(o_ref.dtype)


def sageconv_relu(a_i8, keep_row, x_bf16, wl, wr, b, *, tm, tk):
    n_pad = a_i8.shape[0]
    f = x_bf16.shape[1]
    h = wl.shape[1]
    grid = (n_pad // tm, n_pad // tk)

    cost = pl.CostEstimate(
        flops=2 * n_pad * n_pad * f + 2 * n_pad * (2 * f) * h,
        transcendentals=0,
        bytes_accessed=int(a_i8.size                                  # int8 A, once
                           + (n_pad // tm) * x_bf16.size * 2          # X src re-reads
                           + x_bf16.size * 2                          # X self
                           + (wl.size + wr.size) * 2 + b.size * 4
                           + n_pad * h * 2),                          # bf16 out
    )

    # TODO(synk): pipeline_mode=pl.Buffered(1) on the weight/bias specs and
    # pltpu.CORE_PARALLEL on the i-axis are further v7x-specific knobs.
    return pl.pallas_call(
        _sage_kernel,
        out_shape=jax.ShapeDtypeStruct((n_pad, h), BF16),
        grid_spec=pltpu.PrefetchScalarGridSpec(
            num_scalar_prefetch=0,
            grid=grid,
            in_specs=[
                pl.BlockSpec((tm, tk), lambda i, k: (i, k)),   # A_base tile (int8)
                pl.BlockSpec((1, tk), lambda i, k: (0, k)),    # keep-mask row
                pl.BlockSpec((tk, f), lambda i, k: (k, 0)),    # X src tile
                pl.BlockSpec((tm, f), lambda i, k: (i, 0)),    # X self rows (per-i DMA)
                pl.BlockSpec((f, h), lambda i, k: (0, 0)),     # Wl^T
                pl.BlockSpec((f, h), lambda i, k: (0, 0)),     # Wr^T
                pl.BlockSpec((1, h), lambda i, k: (0, 0)),     # bias
            ],
            out_specs=pl.BlockSpec((tm, h), lambda i, k: (i, 0)),
            scratch_shapes=[pltpu.VMEM((tm, f), jnp.float32),
                            pltpu.VMEM((tm, 1), jnp.float32)],
        ),
        compiler_params=pltpu.CompilerParams(
            dimension_semantics=("parallel", "arbitrary"),
            vmem_limit_bytes=_VMEM_LIMIT,
        ),
        cost_estimate=cost,
    )(a_i8, keep_row, x_bf16, x_bf16, wl, wr, b)


def _pool_head_kernel(m1_ref, x1_ref, m2_ref, x2_ref, m3_ref, x3_ref,
                      w1_ref, b1_ref, w2_ref, b2_ref, w3_ref, b3_ref,
                      o_ref, acc_ref):
    """Tiled fused: x = mean_pool1 + mean_pool2 + mean_pool3 (accumulated over
    n_pad chunks); then lin1/ReLU, lin2/ReLU, dropout(identity, eval), lin3,
    sigmoid.  Lane-dense (B_pad, 128) output."""
    k = pl.program_id(0)

    @pl.when(k == 0)
    def _init():
        acc_ref[...] = jnp.zeros_like(acc_ref)

    p = jnp.dot(m1_ref[...], x1_ref[...], preferred_element_type=jnp.float32)
    p += jnp.dot(m2_ref[...], x2_ref[...], preferred_element_type=jnp.float32)
    p += jnp.dot(m3_ref[...], x3_ref[...], preferred_element_type=jnp.float32)
    acc_ref[...] += p

    @pl.when(k == pl.num_programs(0) - 1)
    def _finalize():
        hdn = jnp.dot(acc_ref[...].astype(BF16), w1_ref[...],
                      preferred_element_type=jnp.float32) + b1_ref[...]
        hdn = jnp.maximum(hdn, 0.0)
        hdn = jnp.dot(hdn.astype(BF16), w2_ref[...],
                      preferred_element_type=jnp.float32) + b2_ref[...]
        hdn = jnp.maximum(hdn, 0.0)        # cols 64..127 stay exactly zero
        # TODO(synk): F.dropout(p=0.5) is implemented as identity (eval/inference).
        z = jnp.dot(hdn.astype(BF16), w3_ref[...],
                    preferred_element_type=jnp.float32) + b3_ref[...]
        o_ref[...] = jax.nn.sigmoid(z)     # only column 0 is meaningful


def pool_head_pallas(m1, x1, m2, x2, m3, x3, w1, b1, w2, b2, w3, b3, *, tpool):
    b_pad = m1.shape[0]
    n_pad = m1.shape[1]
    grid = (n_pad // tpool,)
    m_spec = pl.BlockSpec((b_pad, tpool), lambda k: (0, k))
    x_spec = pl.BlockSpec((tpool, HIDDEN), lambda k: (k, 0))
    w_spec = pl.BlockSpec((HIDDEN, HIDDEN), lambda k: (0, 0))
    b_spec = pl.BlockSpec((1, HIDDEN), lambda k: (0, 0))
    return pl.pallas_call(
        _pool_head_kernel,
        out_shape=jax.ShapeDtypeStruct((b_pad, 128), jnp.float32),
        grid_spec=pltpu.PrefetchScalarGridSpec(
            num_scalar_prefetch=0,
            grid=grid,
            in_specs=[m_spec, x_spec, m_spec, x_spec, m_spec, x_spec,
                      w_spec, b_spec, w_spec, b_spec, w_spec, b_spec],
            out_specs=pl.BlockSpec((b_pad, 128), lambda k: (0, 0)),
            scratch_shapes=[pltpu.VMEM((b_pad, 128), jnp.float32)],
        ),
        compiler_params=pltpu.CompilerParams(
            dimension_semantics=("arbitrary",),
            vmem_limit_bytes=_VMEM_LIMIT,
        ),
    )(m1, x1, m2, x2, m3, x3, w1, b1, w2, b2, w3, b3)


# ------------------------------- plain-JAX glue -------------------------------
# TODO(synk): for very large N, replace the dense O(N^2) int8 adjacency with a
# sparse edge-list aggregation kernel (PrefetchScalarGridSpec gather).

def build_base_adj(edge_index, n_pad):
    """Dense unnormalized adjacency counts A[dst, src], int8, built ONCE."""
    src, dst = edge_index[0], edge_index[1]
    a = jnp.zeros((n_pad, n_pad), jnp.int32).at[dst, src].add(1)
    # TODO(synk): fp8 e4m3 storage on v7x would be a drop-in here as well.
    return jnp.clip(a, 0, 127).astype(jnp.int8)


def topk_pool(x, weight, node_mask, batch, num_graphs, ratio=0.8):
    """TopKPooling semantics (score=tanh(x.w/||w||), keep ceil(ratio*n) per
    graph, multiply kept features by score) with static shapes.  Per-graph
    ranking is sort-based (O(N log N)), not an N^2 comparison matrix."""
    n_pad = x.shape[0]
    w_norm = jnp.sqrt(jnp.sum(weight * weight))
    score = jnp.tanh(jnp.dot(x.astype(jnp.float32), weight) / w_norm)   # (N,) f32
    masked_score = jnp.where(node_mask, score, -jnp.inf)

    idx = jnp.arange(n_pad, dtype=jnp.int32)
    # sort by (batch asc, score desc, idx asc); last key of lexsort is primary
    perm = jnp.lexsort((idx, -masked_score, batch))
    counts = jnp.zeros((num_graphs,), jnp.int32).at[batch].add(1)
    starts = jnp.concatenate([jnp.zeros((1,), jnp.int32), jnp.cumsum(counts)[:-1]])
    rank_sorted = idx - starts[batch[perm]]
    rank = jnp.zeros((n_pad,), jnp.int32).at[perm].set(rank_sorted)

    n_valid = jnp.zeros((num_graphs,), jnp.int32).at[batch].add(node_mask.astype(jnp.int32))
    k_per_graph = jnp.ceil(ratio * n_valid.astype(jnp.float32)).astype(jnp.int32)
    new_mask = node_mask & (rank < k_per_graph[batch])

    score_b = score.astype(x.dtype)
    x_new = jnp.where(new_mask[:, None], x * score_b[:, None], jnp.zeros_like(x))
    return x_new, new_mask


def mean_pool_matrix(node_mask, batch, num_graphs, b_pad):
    m = (batch[None, :] == jnp.arange(num_graphs)[:, None]) & node_mask[None, :]
    m = m.astype(jnp.float32)
    cnt = jnp.sum(m, axis=1, keepdims=True)
    m = m / jnp.maximum(cnt, 1.0)
    return jnp.pad(m, ((0, b_pad - num_graphs), (0, 0)))


# --------------------------------- forward ---------------------------------

@partial(jax.jit, static_argnames=("num_graphs", "b_pad"))
def gnn_forward(params, x_ids, edge_index, batch, num_graphs, b_pad=8):
    n = x_ids.shape[0]
    n_pad, tm, tk = _choose_tiles(n)
    b_pad = max(b_pad, _round_up(num_graphs, 8))

    # item_embedding(x).squeeze(1), padded to n_pad nodes, kept in bf16 end-to-end
    x_emb = params["emb"][x_ids[:, 0]].astype(BF16)                  # (n, F)
    x = jnp.zeros((n_pad, EMBED_DIM), BF16).at[:n].set(x_emb)
    node_mask = jnp.arange(n_pad) < n
    batch_p = jnp.zeros((n_pad,), jnp.int32).at[:n].set(batch)

    a_base = build_base_adj(edge_index, n_pad)                       # int8, built once

    ms, xs = [], []
    for i in (1, 2, 3):
        keep = node_mask.astype(jnp.float32).reshape(1, n_pad)
        x = sageconv_relu(a_base, keep, x,
                          params[f"conv{i}_wl"], params[f"conv{i}_wr"],
                          params[f"conv{i}_b"], tm=tm, tk=tk)
        x, node_mask = topk_pool(x, params[f"pool{i}_w"], node_mask,
                                 batch_p, num_graphs)
        ms.append(mean_pool_matrix(node_mask, batch_p, num_graphs, b_pad).astype(BF16))
        xs.append(x)

    out = pool_head_pallas(ms[0], xs[0], ms[1], xs[1], ms[2], xs[2],
                           params["lin1_w"], params["lin1_b"],
                           params["lin2_w"], params["lin2_b"],
                           params["lin3_w"], params["lin3_b"], tpool=tk)
    return out[:num_graphs, 0]                                       # == .squeeze(1)


# ------------------------------ parameter init ------------------------------

def init_params(key, num_items, embed_dim=EMBED_DIM):
    ks = jax.random.split(key, 16)

    def lin(k, fan_in, fan_out):
        kw, kb = jax.random.split(k)
        bound = 1.0 / math.sqrt(fan_in)
        w = jax.random.uniform(kw, (fan_out, fan_in), jnp.float32, -bound, bound)
        b = jax.random.uniform(kb, (fan_out,), jnp.float32, -bound, bound)
        return w, b

    p = {"emb": jax.random.normal(ks[0], (num_items + 10, embed_dim), jnp.float32)}
    in_dims = {1: embed_dim, 2: HIDDEN, 3: HIDDEN}
    for i in (1, 2, 3):
        din = in_dims[i]
        wl, bl = lin(ks[i * 3], din, HIDDEN)       # lin_l (neighbors, has bias)
        wr, _ = lin(ks[i * 3 + 1], din, HIDDEN)    # lin_r (root, no bias)
        p[f"conv{i}_wl"] = wl.T.astype(BF16)       # (din, H)
        p[f"conv{i}_wr"] = wr.T.astype(BF16)       # (din, H)
        p[f"conv{i}_b"] = bl.reshape(1, HIDDEN)    # f32
        p[f"pool{i}_w"] = jax.random.uniform(ks[i * 3 + 2], (HIDDEN,), jnp.float32, -1.0, 1.0)

    w1, b1 = lin(ks[12], 128, 128)
    w2, b2 = lin(ks[13], 128, 64)
    w3, b3 = lin(ks[14], 64, 1)
    p["lin1_w"] = w1.T.astype(BF16)                                   # (128, 128)
    p["lin1_b"] = b1.reshape(1, 128)
    # lin2 / lin3 zero-padded to 128 lanes for lane-dense stores
    p["lin2_w"] = jnp.zeros((128, 128), jnp.float32).at[:, :64].set(w2.T).astype(BF16)
    p["lin2_b"] = jnp.zeros((1, 128), jnp.float32).at[:, :64].set(b2.reshape(1, 64))
    p["lin3_w"] = jnp.zeros((128, 128), jnp.float32).at[:64, :1].set(w3.T).astype(BF16)
    p["lin3_b"] = jnp.zeros((1, 128), jnp.float32).at[:, :1].set(b3.reshape(1, 1))
    # bn1 / bn2 / act modules exist in __init__ but bn1/bn2 are unused in forward.
    return p


# ----------------------------------- main -----------------------------------

if __name__ == "__main__":
    key = jax.random.PRNGKey(0)
    num_items = 50
    num_graphs = 2
    nodes_per_graph = 100        # N=200 -> n_pad=256, tm=tk=128 -> (2,2) grid exercised
    N = num_graphs * nodes_per_graph

    params = init_params(key, num_items)

    # bidirectional ring graph per batch element
    src, dst = [], []
    for g in range(num_graphs):
        base = g * nodes_per_graph
        for i in range(nodes_per_graph):
            j = (i + 1) % nodes_per_graph
            src += [base + i, base + j]
            dst += [base + j, base + i]
    edge_index = jnp.array([src, dst], dtype=jnp.int32)          # (2, E)
    batch = jnp.array(sum(([g] * nodes_per_graph for g in range(num_graphs)), []),
                      dtype=jnp.int32)                           # (N,)
    x_ids = jax.random.randint(jax.random.PRNGKey(1), (N, 1), 0, num_items,
                               dtype=jnp.int32)                  # (N, 1)

    out = gnn_forward(params, x_ids, edge_index, batch, num_graphs)
    out = jax.block_until_ready(out)
    assert out.shape == (num_graphs,)
    assert bool(jnp.all(jnp.isfinite(out)))
    assert bool(jnp.all((out >= 0.0) & (out <= 1.0)))
    print("KERNEL_OK")
</pallas_src>

<mosaic_0001>
module attributes {stable_mosaic.version = 11 : i64} {
  func.func private @main(%arg0: i32) attributes {dimension_semantics = [#tpu.dimension_semantics<core_parallel>], iteration_bounds = array<i64: 2>, tpu.core_type = #tpu.core_type<sc_scalar_subcore>, window_params = []} {
    return
  }
}

module attributes {stable_mosaic.version = 11 : i64} {
  func.func private @main(%arg0: i32) attributes {dimension_semantics = [#tpu.dimension_semantics<core_parallel>], iteration_bounds = array<i64: 2>, tpu.core_type = #tpu.core_type<sc_scalar_subcore>, window_params = []} {
    return
  }
}

module attributes {stable_mosaic.version = 11 : i64} {
  func.func @_sage_kernel(%arg0: i32, %arg1: i32, %arg2: memref<128x128xi8, #tpu.memory_space<vmem>>, %arg3: memref<1x128xf32, #tpu.memory_space<vmem>>, %arg4: memref<128x128xbf16, #tpu.memory_space<vmem>>, %arg5: memref<128x128xbf16, #tpu.memory_space<vmem>>, %arg6: memref<128x128xbf16, #tpu.memory_space<vmem>>, %arg7: memref<128x128xbf16, #tpu.memory_space<vmem>>, %arg8: memref<1x128xf32, #tpu.memory_space<vmem>>, %arg9: memref<128x128xbf16, #tpu.memory_space<vmem>>, %arg10: memref<128x128xf32, #tpu.memory_space<vmem>>, %arg11: memref<128x1xf32, #tpu.memory_space<vmem>>) attributes {dimension_semantics = [#tpu.dimension_semantics<parallel>, #tpu.dimension_semantics<arbitrary>], iteration_bounds = array<i64: 2, 2>, scalar_prefetch = 0 : i64, scratch_operands = 2 : i64, tpu.core_type = #tpu.core_type<tc>, window_params = [{transform_indices = @transform_0, window_bounds = array<i64: 128, 128>}, {transform_indices = @transform_1, window_bounds = array<i64: 1, 128>}, {transform_indices = @transform_2, window_bounds = array<i64: 128, 128>}, {transform_indices = @transform_3, window_bounds = array<i64: 128, 128>}, {pipeline_mode = #tpu.pipeline_mode<synchronous>, transform_indices = @transform_4, window_bounds = array<i64: 128, 128>}, {pipeline_mode = #tpu.pipeline_mode<synchronous>, transform_indices = @transform_5, window_bounds = array<i64: 128, 128>}, {pipeline_mode = #tpu.pipeline_mode<synchronous>, transform_indices = @transform_6, window_bounds = array<i64: 1, 128>}, {transform_indices = @transform_7, window_bounds = array<i64: 128, 128>}]} {
    %c0_i32 = arith.constant 0 : i32
    %0 = arith.cmpi eq, %arg1, %c0_i32 : i32
    %1 = arith.extui %0 : i1 to i32
    %c0_i32_0 = arith.constant 0 : i32
    %2 = arith.cmpi ne, %1, %c0_i32_0 : i32
    scf.if %2 {
      %cst_16 = arith.constant 0.000000e+00 : f32
      %22 = vector.broadcast %cst_16 : f32 to vector<128x128xf32>
      %c0_17 = arith.constant 0 : index
      %c0_18 = arith.constant 0 : index
      %23 = vector.load %arg10[%c0_17, %c0_18] : memref<128x128xf32, #tpu.memory_space<vmem>>, vector<128x128xf32>
      tpu.vector_store %arg10[%c0_17, %c0_18], %22 {strides = array<i32>} : memref<128x128xf32, #tpu.memory_space<vmem>>, vector<128x128xf32>,
      %cst_19 = arith.constant 0.000000e+00 : f32
      %24 = vector.broadcast %cst_19 : f32 to vector<128x1xf32>
      %c0_20 = arith.constant 0 : index
      %c0_21 = arith.constant 0 : index
      %25 = vector.load %arg11[%c0_20, %c0_21] : memref<128x1xf32, #tpu.memory_space<vmem>>, vector<128x1xf32>
      tpu.vector_store %arg11[%c0_20, %c0_21], %24 {strides = array<i32>} : memref<128x1xf32, #tpu.memory_space<vmem>>, vector<128x1xf32>,
    } else {
    }
    %c0 = arith.constant 0 : index
    %c0_1 = arith.constant 0 : index
    %3 = vector.load %arg2[%c0, %c0_1] : memref<128x128xi8, #tpu.memory_space<vmem>>, vector<128x128xi8>
    %4 = arith.sitofp %3 : vector<128x128xi8> to vector<128x128xf32>
    %c0_2 = arith.constant 0 : index
    %c0_3 = arith.constant 0 : index
    %5 = vector.load %arg10[%c0_2, %c0_3] : memref<128x128xf32, #tpu.memory_space<vmem>>, vector<128x128xf32>
    %6 = arith.truncf %4 : vector<128x128xf32> to vector<128x128xbf16>
    %c0_4 = arith.constant 0 : index
    %c0_5 = arith.constant 0 : index
    %7 = vector.load %arg4[%c0_4, %c0_5] : memref<128x128xbf16, #tpu.memory_space<vmem>>, vector<128x128xbf16>
    %cst = arith.constant dense<0.000000e+00> : vector<128x128xf32>
    %8 = tpu.matmul %6, %7, %cst {dimension_numbers = #tpu.dot_dimension_numbers<[1], [0], [0], [1], [0, 0, 1, 1], [], []>} : vector<128x128xbf16>, vector<128x128xbf16>, vector<128x128xf32> -> vector<128x128xf32>
    %9 = arith.addf %5, %8 : vector<128x128xf32>
    %c0_6 = arith.constant 0 : index
    %c0_7 = arith.constant 0 : index
    %10 = vector.load %arg10[%c0_6, %c0_7] : memref<128x128xf32, #tpu.memory_space<vmem>>, vector<128x128xf32>
    tpu.vector_store %arg10[%c0_6, %c0_7], %9 {strides = array<i32>} : memref<128x128xf32, #tpu.memory_space<vmem>>, vector<128x128xf32>,
    %c0_8 = arith.constant 0 : index
    %c0_9 = arith.constant 0 : index
    %11 = vector.load %arg11[%c0_8, %c0_9] : memref<128x1xf32, #tpu.memory_space<vmem>>, vector<128x1xf32>
    %c0_10 = arith.constant 0 : index
    %c0_11 = arith.constant 0 : index
    %12 = vector.load %arg3[%c0_10, %c0_11] : memref<1x128xf32, #tpu.memory_space<vmem>>, vector<1x128xf32>
    %13 = vector.broadcast %12 : vector<1x128xf32> to vector<128x128xf32>
    %14 = arith.mulf %4, %13 : vector<128x128xf32>
    %cst_12 = arith.constant dense<0.000000e+00> : vector<128xf32>
    %15 = vector.multi_reduction <add>, %14, %cst_12 [1] : vector<128x128xf32> to vector<128xf32>
    %16 = vector.shape_cast %15 : vector<128xf32> to vector<128x1xf32>
    %17 = arith.addf %11, %16 : vector<128x1xf32>
    %c0_13 = arith.constant 0 : index
    %c0_14 = arith.constant 0 : index
    %18 = vector.load %arg11[%c0_13, %c0_14] : memref<128x1xf32, #tpu.memory_space<vmem>>, vector<128x1xf32>
    tpu.vector_store %arg11[%c0_13, %c0_14], %17 {strides = array<i32>} : memref<128x1xf32, #tpu.memory_space<vmem>>, vector<128x1xf32>,
    %c1_i32 = arith.constant 1 : i32
    %19 = arith.cmpi eq, %arg1, %c1_i32 : i32
    %20 = arith.extui %19 : i1 to i32
    %c0_i32_15 = arith.constant 0 : i32
    %21 = arith.cmpi ne, %20, %c0_i32_15 : i32
    scf.if %21 {
      %c0_16 = arith.constant 0 : index
      %c0_17 = arith.constant 0 : index
      %22 = vector.load %arg11[%c0_16, %c0_17] : memref<128x1xf32, #tpu.memory_space<vmem>>, vector<128x1xf32>
      %cst_18 = arith.constant 1.000000e+00 : f32
      %23 = vector.broadcast %cst_18 : f32 to vector<128x1xf32>
      %24 = arith.maximumf %22, %23 : vector<128x1xf32>
      %25 = tpu.reciprocal %24 {approx = true} : vector<128x1xf32> -> vector<128x1xf32>
      %c0_19 = arith.constant 0 : index
      %c0_20 = arith.constant 0 : index
      %26 = vector.load %arg10[%c0_19, %c0_20] : memref<128x128xf32, #tpu.memory_space<vmem>>, vector<128x128xf32>
      %27 = vector.broadcast %25 : vector<128x1xf32> to vector<128x128xf32>
      %28 = arith.mulf %26, %27 : vector<128x128xf32>
      %29 = arith.truncf %28 : vector<128x128xf32> to vector<128x128xbf16>
      %c0_21 = arith.constant 0 : index
      %c0_22 = arith.constant 0 : index
      %30 = vector.load %arg6[%c0_21, %c0_22] : memref<128x128xbf16, #tpu.memory_space<vmem>>, vector<128x128xbf16>
      %cst_23 = arith.constant dense<0.000000e+00> : vector<128x128xf32>
      %31 = tpu.matmul %29, %30, %cst_23 {dimension_numbers = #tpu.dot_dimension_numbers<[1], [0], [0], [1], [0, 0, 1, 1], [], []>} : vector<128x128xbf16>, vector<128x128xbf16>, vector<128x128xf32> -> vector<128x128xf32>
      %c0_24 = arith.constant 0 : index
      %c0_25 = arith.constant 0 : index
      %32 = vector.load %arg5[%c0_24, %c0_25] : memref<128x128xbf16, #tpu.memory_space<vmem>>, vector<128x128xbf16>
      %c0_26 = arith.constant 0 : index
      %c0_27 = arith.constant 0 : index
      %33 = vector.load %arg7[%c0_26, %c0_27] : memref<128x128xbf16, #tpu.memory_space<vmem>>, vector<128x128xbf16>
      %cst_28 = arith.constant dense<0.000000e+00> : vector<128x128xf32>
      %34 = tpu.matmul %32, %33, %cst_28 {dimension_numbers = #tpu.dot_dimension_numbers<[1], [0], [0], [1], [0, 0, 1, 1], [], []>} : vector<128x128xbf16>, vector<128x128xbf16>, vector<128x128xf32> -> vector<128x128xf32>
      %35 = arith.addf %31, %34 : vector<128x128xf32>
      %c0_29 = arith.constant 0 : index
      %c0_30 = arith.constant 0 : index
      %36 = vector.load %arg8[%c0_29, %c0_30] : memref<1x128xf32, #tpu.memory_space<vmem>>, vector<1x128xf32>
      %37 = vector.broadcast %36 : vector<1x128xf32> to vector<128x128xf32>
      %38 = arith.addf %35, %37 : vector<128x128xf32>
      %cst_31 = arith.constant 0.000000e+00 : f32
      %39 = vector.broadcast %cst_31 : f32 to vector<128x128xf32>
      %40 = arith.maximumf %38, %39 : vector<128x128xf32>
      %41 = arith.truncf %40 : vector<128x128xf32> to vector<128x128xbf16>
      %c0_32 = arith.constant 0 : index
      %c0_33 = arith.constant 0 : index
      %42 = vector.load %arg9[%c0_32, %c0_33] : memref<128x128xbf16, #tpu.memory_space<vmem>>, vector<128x128xbf16>
      tpu.vector_store %arg9[%c0_32, %c0_33], %41 {strides = array<i32>} : memref<128x128xbf16, #tpu.memory_space<vmem>>, vector<128x128xbf16>,
    } else {
    }
    return
  }
  func.func @transform_0(%arg0: i32, %arg1: i32) -> (i32, i32) {
    %c0_i32 = arith.constant 0 : i32
    return %arg0, %arg1 : i32, i32
  }
  func.func @transform_1(%arg0: i32, %arg1: i32) -> (i32, i32) {
    %c0_i32 = arith.constant 0 : i32
    %c0_i32_0 = arith.constant 0 : i32
    return %c0_i32, %arg1 : i32, i32
  }
  func.func @transform_2(%arg0: i32, %arg1: i32) -> (i32, i32) {
    %c0_i32 = arith.constant 0 : i32
    %c0_i32_0 = arith.constant 0 : i32
    return %arg1, %c0_i32 : i32, i32
  }
  func.func @transform_3(%arg0: i32, %arg1: i32) -> (i32, i32) {
    %c0_i32 = arith.constant 0 : i32
    %c0_i32_0 = arith.constant 0 : i32
    return %arg0, %c0_i32 : i32, i32
  }
  func.func @transform_4(%arg0: i32, %arg1: i32) -> (i32, i32) {
    %c0_i32 = arith.constant 0 : i32
    %c0_i32_0 = arith.constant 0 : i32
    %c0_i32_1 = arith.constant 0 : i32
    return %c0_i32, %c0_i32_0 : i32, i32
  }
  func.func @transform_5(%arg0: i32, %arg1: i32) -> (i32, i32) {
    %c0_i32 = arith.constant 0 : i32
    %c0_i32_0 = arith.constant 0 : i32
    %c0_i32_1 = arith.constant 0 : i32
    return %c0_i32, %c0_i32_0 : i32, i32
  }
  func.func @transform_6(%arg0: i32, %arg1: i32) -> (i32, i32) {
    %c0_i32 = arith.constant 0 : i32
    %c0_i32_0 = arith.constant 0 : i32
    %c0_i32_1 = arith.constant 0 : i32
    return %c0_i32, %c0_i32_0 : i32, i32
  }
  func.func @transform_7(%arg0: i32, %arg1: i32) -> (i32, i32) {
    %c0_i32 = arith.constant 0 : i32
    %c0_i32_0 = arith.constant 0 : i32
    return %arg0, %c0_i32 : i32, i32
  }
}

module attributes {stable_mosaic.version = 11 : i64} {
  func.func @_pool_head_kernel(%arg0: i32, %arg1: memref<8x128xbf16, #tpu.memory_space<vmem>>, %arg2: memref<128x128xbf16, #tpu.memory_space<vmem>>, %arg3: memref<8x128xbf16, #tpu.memory_space<vmem>>, %arg4: memref<128x128xbf16, #tpu.memory_space<vmem>>, %arg5: memref<8x128xbf16, #tpu.memory_space<vmem>>, %arg6: memref<128x128xbf16, #tpu.memory_space<vmem>>, %arg7: memref<128x128xbf16, #tpu.memory_space<vmem>>, %arg8: memref<1x128xf32, #tpu.memory_space<vmem>>, %arg9: memref<128x128xbf16, #tpu.memory_space<vmem>>, %arg10: memref<1x128xf32, #tpu.memory_space<vmem>>, %arg11: memref<128x128xbf16, #tpu.memory_space<vmem>>, %arg12: memref<1x128xf32, #tpu.memory_space<vmem>>, %arg13: memref<8x128xf32, #tpu.memory_space<vmem>>, %arg14: memref<8x128xf32, #tpu.memory_space<vmem>>) attributes {dimension_semantics = [#tpu.dimension_semantics<arbitrary>], iteration_bounds = array<i64: 2>, scalar_prefetch = 0 : i64, scratch_operands = 1 : i64, tpu.core_type = #tpu.core_type<tc>, window_params = [{transform_indices = @transform_0, window_bounds = array<i64: 8, 128>}, {transform_indices = @transform_1, window_bounds = array<i64: 128, 128>}, {transform_indices = @transform_2, window_bounds = array<i64: 8, 128>}, {transform_indices = @transform_3, window_bounds = array<i64: 128, 128>}, {transform_indices = @transform_4, window_bounds = array<i64: 8, 128>}, {transform_indices = @transform_5, window_bounds = array<i64: 128, 128>}, {pipeline_mode = #tpu.pipeline_mode<synchronous>, transform_indices = @transform_6, window_bounds = array<i64: 128, 128>}, {pipeline_mode = #tpu.pipeline_mode<synchronous>, transform_indices = @transform_7, window_bounds = array<i64: 1, 128>}, {pipeline_mode = #tpu.pipeline_mode<synchronous>, transform_indices = @transform_8, window_bounds = array<i64: 128, 128>}, {pipeline_mode = #tpu.pipeline_mode<synchronous>, transform_indices = @transform_9, window_bounds = array<i64: 1, 128>}, {pipeline_mode = #tpu.pipeline_mode<synchronous>, transform_indices = @transform_10, window_bounds = array<i64: 128, 128>}, {pipeline_mode = #tpu.pipeline_mode<synchronous>, transform_indices = @transform_11, window_bounds = array<i64: 1, 128>}, {pipeline_mode = #tpu.pipeline_mode<synchronous>, transform_indices = @transform_12, window_bounds = array<i64: 8, 128>}]} {
    %c0_i32 = arith.constant 0 : i32
    %0 = arith.cmpi eq, %arg0, %c0_i32 : i32
    %1 = arith.extui %0 : i1 to i32
    %c0_i32_0 = arith.constant 0 : i32
    %2 = arith.cmpi ne, %1, %c0_i32_0 : i32
    scf.if %2 {
      %cst_19 = arith.constant 0.000000e+00 : f32
      %20 = vector.broadcast %cst_19 : f32 to vector<8x128xf32>
      %c0_20 = arith.constant 0 : index
      %c0_21 = arith.constant 0 : index
      %21 = vector.load %arg14[%c0_20, %c0_21] : memref<8x128xf32, #tpu.memory_space<vmem>>, vector<8x128xf32>
      tpu.vector_store %arg14[%c0_20, %c0_21], %20 {strides = array<i32>} : memref<8x128xf32, #tpu.memory_space<vmem>>, vector<8x128xf32>,
    } else {
    }
    %c0 = arith.constant 0 : index
    %c0_1 = arith.constant 0 : index
    %3 = vector.load %arg1[%c0, %c0_1] : memref<8x128xbf16, #tpu.memory_space<vmem>>, vector<8x128xbf16>
    %c0_2 = arith.constant 0 : index
    %c0_3 = arith.constant 0 : index
    %4 = vector.load %arg2[%c0_2, %c0_3] : memref<128x128xbf16, #tpu.memory_space<vmem>>, vector<128x128xbf16>
    %cst = arith.constant dense<0.000000e+00> : vector<8x128xf32>
    %5 = tpu.matmul %3, %4, %cst {dimension_numbers = #tpu.dot_dimension_numbers<[1], [0], [0], [1], [0, 0, 1, 1], [], []>} : vector<8x128xbf16>, vector<128x128xbf16>, vector<8x128xf32> -> vector<8x128xf32>
    %c0_4 = arith.constant 0 : index
    %c0_5 = arith.constant 0 : index
    %6 = vector.load %arg3[%c0_4, %c0_5] : memref<8x128xbf16, #tpu.memory_space<vmem>>, vector<8x128xbf16>
    %c0_6 = arith.constant 0 : index
    %c0_7 = arith.constant 0 : index
    %7 = vector.load %arg4[%c0_6, %c0_7] : memref<128x128xbf16, #tpu.memory_space<vmem>>, vector<128x128xbf16>
    %cst_8 = arith.constant dense<0.000000e+00> : vector<8x128xf32>
    %8 = tpu.matmul %6, %7, %cst_8 {dimension_numbers = #tpu.dot_dimension_numbers<[1], [0], [0], [1], [0, 0, 1, 1], [], []>} : vector<8x128xbf16>, vector<128x128xbf16>, vector<8x128xf32> -> vector<8x128xf32>
    %9 = arith.addf %5, %8 : vector<8x128xf32>
    %c0_9 = arith.constant 0 : index
    %c0_10 = arith.constant 0 : index
    %10 = vector.load %arg5[%c0_9, %c0_10] : memref<8x128xbf16, #tpu.memory_space<vmem>>, vector<8x128xbf16>
    %c0_11 = arith.constant 0 : index
    %c0_12 = arith.constant 0 : index
    %11 = vector.load %arg6[%c0_11, %c0_12] : memref<128x128xbf16, #tpu.memory_space<vmem>>, vector<128x128xbf16>
    %cst_13 = arith.constant dense<0.000000e+00> : vector<8x128xf32>
    %12 = tpu.matmul %10, %11, %cst_13 {dimension_numbers = #tpu.dot_dimension_numbers<[1], [0], [0], [1], [0, 0, 1, 1], [], []>} : vector<8x128xbf16>, vector<128x128xbf16>, vector<8x128xf32> -> vector<8x128xf32>
    %13 = arith.addf %9, %12 : vector<8x128xf32>
    %c0_14 = arith.constant 0 : index
    %c0_15 = arith.constant 0 : index
    %14 = vector.load %arg14[%c0_14, %c0_15] : memref<8x128xf32, #tpu.memory_space<vmem>>, vector<8x128xf32>
    %15 = arith.addf %14, %13 : vector<8x128xf32>
    %c0_16 = arith.constant 0 : index
    %c0_17 = arith.constant 0 : index
    %16 = vector.load %arg14[%c0_16, %c0_17] : memref<8x128xf32, #tpu.memory_space<vmem>>, vector<8x128xf32>
    tpu.vector_store %arg14[%c0_16, %c0_17], %15 {strides = array<i32>} : memref<8x128xf32, #tpu.memory_space<vmem>>, vector<8x128xf32>,
    %c1_i32 = arith.constant 1 : i32
    %17 = arith.cmpi eq, %arg0, %c1_i32 : i32
    %18 = arith.extui %17 : i1 to i32
    %c0_i32_18 = arith.constant 0 : i32
    %19 = arith.cmpi ne, %18, %c0_i32_18 : i32
    scf.if %19 {
      %c0_19 = arith.constant 0 : index
      %c0_20 = arith.constant 0 : index
      %20 = vector.load %arg14[%c0_19, %c0_20] : memref<8x128xf32, #tpu.memory_space<vmem>>, vector<8x128xf32>
      %21 = arith.truncf %20 : vector<8x128xf32> to vector<8x128xbf16>
      %c0_21 = arith.constant 0 : index
      %c0_22 = arith.constant 0 : index
      %22 = vector.load %arg7[%c0_21, %c0_22] : memref<128x128xbf16, #tpu.memory_space<vmem>>, vector<128x128xbf16>
      %cst_23 = arith.constant dense<0.000000e+00> : vector<8x128xf32>
      %23 = tpu.matmul %21, %22, %cst_23 {dimension_numbers = #tpu.dot_dimension_numbers<[1], [0], [0], [1], [0, 0, 1, 1], [], []>} : vector<8x128xbf16>, vector<128x128xbf16>, vector<8x128xf32> -> vector<8x128xf32>
      %c0_24 = arith.constant 0 : index
      %c0_25 = arith.constant 0 : index
      %24 = vector.load %arg8[%c0_24, %c0_25] : memref<1x128xf32, #tpu.memory_space<vmem>>, vector<1x128xf32>
      %25 = vector.broadcast %24 : vector<1x128xf32> to vector<8x128xf32>
      %26 = arith.addf %23, %25 : vector<8x128xf32>
      %cst_26 = arith.constant 0.000000e+00 : f32
      %27 = vector.broadcast %cst_26 : f32 to vector<8x128xf32>
      %28 = arith.maximumf %26, %27 : vector<8x128xf32>
      %29 = arith.truncf %28 : vector<8x128xf32> to vector<8x128xbf16>
      %c0_27 = arith.constant 0 : index
      %c0_28 = arith.constant 0 : index
      %30 = vector.load %arg9[%c0_27, %c0_28] : memref<128x128xbf16, #tpu.memory_space<vmem>>, vector<128x128xbf16>
      %cst_29 = arith.constant dense<0.000000e+00> : vector<8x128xf32>
      %31 = tpu.matmul %29, %30, %cst_29 {dimension_numbers = #tpu.dot_dimension_numbers<[1], [0], [0], [1], [0, 0, 1, 1], [], []>} : vector<8x128xbf16>, vector<128x128xbf16>, vector<8x128xf32> -> vector<8x128xf32>
      %c0_30 = arith.constant 0 : index
      %c0_31 = arith.constant 0 : index
      %32 = vector.load %arg10[%c0_30, %c0_31] : memref<1x128xf32, #tpu.memory_space<vmem>>, vector<1x128xf32>
      %33 = vector.broadcast %32 : vector<1x128xf32> to vector<8x128xf32>
      %34 = arith.addf %31, %33 : vector<8x128xf32>
      %cst_32 = arith.constant 0.000000e+00 : f32
      %35 = vector.broadcast %cst_32 : f32 to vector<8x128xf32>
      %36 = arith.maximumf %34, %35 : vector<8x128xf32>
      %37 = arith.truncf %36 : vector<8x128xf32> to vector<8x128xbf16>
      %c0_33 = arith.constant 0 : index
      %c0_34 = arith.constant 0 : index
      %38 = vector.load %arg11[%c0_33, %c0_34] : memref<128x128xbf16, #tpu.memory_space<vmem>>, vector<128x128xbf16>
      %cst_35 = arith.constant dense<0.000000e+00> : vector<8x128xf32>
      %39 = tpu.matmul %37, %38, %cst_35 {dimension_numbers = #tpu.dot_dimension_numbers<[1], [0], [0], [1], [0, 0, 1, 1], [], []>} : vector<8x128xbf16>, vector<128x128xbf16>, vector<8x128xf32> -> vector<8x128xf32>
      %c0_36 = arith.constant 0 : index
      %c0_37 = arith.constant 0 : index
      %40 = vector.load %arg12[%c0_36, %c0_37] : memref<1x128xf32, #tpu.memory_space<vmem>>, vector<1x128xf32>
      %41 = vector.broadcast %40 : vector<1x128xf32> to vector<8x128xf32>
      %42 = arith.addf %39, %41 : vector<8x128xf32>
      %43 = arith.negf %42 : vector<8x128xf32>
      %44 = math.exp %43 : vector<8x128xf32>
      %cst_38 = arith.constant 1.000000e+00 : f32
      %45 = vector.broadcast %cst_38 : f32 to vector<8x128xf32>
      %46 = arith.addf %45, %44 : vector<8x128xf32>
      %47 = arith.divf %45, %46 : vector<8x128xf32>
      %c0_39 = arith.constant 0 : index
      %c0_40 = arith.constant 0 : index
      %48 = vector.load %arg13[%c0_39, %c0_40] : memref<8x128xf32, #tpu.memory_space<vmem>>, vector<8x128xf32>
      tpu.vector_store %arg13[%c0_39, %c0_40], %47 {strides = array<i32>} : memref<8x128xf32, #tpu.memory_space<vmem>>, vector<8x128xf32>,
    } else {
    }
    return
  }
  func.func @transform_0(%arg0: i32) -> (i32, i32) {
    %c0_i32 = arith.constant 0 : i32
    %c0_i32_0 = arith.constant 0 : i32
    return %c0_i32, %arg0 : i32, i32
  }
  func.func @transform_1(%arg0: i32) -> (i32, i32) {
    %c0_i32 = arith.constant 0 : i32
    %c0_i32_0 = arith.constant 0 : i32
    return %arg0, %c0_i32 : i32, i32
  }
  func.func @transform_2(%arg0: i32) -> (i32, i32) {
    %c0_i32 = arith.constant 0 : i32
    %c0_i32_0 = arith.constant 0 : i32
    return %c0_i32, %arg0 : i32, i32
  }
  func.func @transform_3(%arg0: i32) -> (i32, i32) {
    %c0_i32 = arith.constant 0 : i32
    %c0_i32_0 = arith.constant 0 : i32
    return %arg0, %c0_i32 : i32, i32
  }
  func.func @transform_4(%arg0: i32) -> (i32, i32) {
    %c0_i32 = arith.constant 0 : i32
    %c0_i32_0 = arith.constant 0 : i32
    return %c0_i32, %arg0 : i32, i32
  }
  func.func @transform_5(%arg0: i32) -> (i32, i32) {
    %c0_i32 = arith.constant 0 : i32
    %c0_i32_0 = arith.constant 0 : i32
    return %arg0, %c0_i32 : i32, i32
  }
  func.func @transform_6(%arg0: i32) -> (i32, i32) {
    %c0_i32 = arith.constant 0 : i32
    %c0_i32_0 = arith.constant 0 : i32
    %c0_i32_1 = arith.constant 0 : i32
    return %c0_i32, %c0_i32_0 : i32, i32
  }
  func.func @transform_7(%arg0: i32) -> (i32, i32) {
    %c0_i32 = arith.constant 0 : i32
    %c0_i32_0 = arith.constant 0 : i32
    %c0_i32_1 = arith.constant 0 : i32
    return %c0_i32, %c0_i32_0 : i32, i32
  }
  func.func @transform_8(%arg0: i32) -> (i32, i32) {
    %c0_i32 = arith.constant 0 : i32
    %c0_i32_0 = arith.constant 0 : i32
    %c0_i32_1 = arith.constant 0 : i32
    return %c0_i32, %c0_i32_0 : i32, i32
  }
  func.func @transform_9(%arg0: i32) -> (i32, i32) {
    %c0_i32 = arith.constant 0 : i32
    %c0_i32_0 = arith.constant 0 : i32
    %c0_i32_1 = arith.constant 0 : i32
    return %c0_i32, %c0_i32_0 : i32, i32
  }
  func.func @transform_10(%arg0: i32) -> (i32, i32) {
    %c0_i32 = arith.constant 0 : i32
    %c0_i32_0 = arith.constant 0 : i32
    %c0_i32_1 = arith.constant 0 : i32
    return %c0_i32, %c0_i32_0 : i32, i32
  }
  func.func @transform_11(%arg0: i32) -> (i32, i32) {
    %c0_i32 = arith.constant 0 : i32
    %c0_i32_0 = arith.constant 0 : i32
    %c0_i32_1 = arith.constant 0 : i32
    return %c0_i32, %c0_i32_0 : i32, i32
  }
  func.func @transform_12(%arg0: i32) -> (i32, i32) {
    %c0_i32 = arith.constant 0 : i32
    %c0_i32_0 = arith.constant 0 : i32
    %c0_i32_1 = arith.constant 0 : i32
    return %c0_i32, %c0_i32_0 : i32, i32
  }
}

</mosaic_0001>

<bundles_post_ra>
// kernel: gnn_forward.4
= control target key start
LH: loop header
LB: loop body
LE: loop exit
PB: predicated region body
PF: predicated region fallthrough
CT: control target
= control target key end

     0   :  { %s2416_s0 = inlined_call_operand.vmem [shape: s8[256,256], index: 0, kind: input, shape index: {}]   ;;  %s2417_s1 = inlined_call_operand.vmem [shape: f32[1,256], index: 1, kind: input, shape index: {}]   ;;  %s2418_s2 = inlined_call_operand.vmem [shape: bf16[256,128], index: 2, kind: input, shape index: {}, may-alias: {2,3}]   ;;  %s2419_s3 = inlined_call_operand.vmem [shape: bf16[256,128], index: 3, kind: input, shape index: {}, may-alias: {2,3}]   ;;  %s2420_s4 = inlined_call_operand.vmem [shape: bf16[128,128], index: 4, kind: input, shape index: {}]   ;;  %s2421_s5 = inlined_call_operand.vmem [shape: bf16[128,128], index: 5, kind: input, shape index: {}]   ;;  %s2422_s6 = inlined_call_operand.vmem [shape: f32[1,128], index: 6, kind: input, shape index: {}]   ;;  %s2423_s7 = inlined_call_operand.vmem [shape: bf16[256,128], index: 7, kind: output, shape index: {}]  }
   0x1   :  { %2426 = sst [smem:[#allocation7_spill]] %s2416_s0 }
   0x2   :  { %s2115_s24 = smov 0   ;;  %s2117_s25 = smov 0  }
   0x3   :  { %s2119_s26 = smov 0   ;;  %s2121_s27 = smov 0  }
   0x4   :  { %s2123_s28 = smov 0   ;;  %s2125_s29 = smov 0  }
   0x5   :  { %s2127_s30 = smov 0  }
   0x6 LB: > { %s26_s8 = sadd.s32 1, %s2063_s28  ;;  %s29_s9 = sadd.s32 1, %s2067_s29  ;;  %s2071_s30 = sphi %s2127_s30, %s17_s30   ;;  %s2067_s29 = sphi %s2125_s29, %s2437_s29   ;;  %s2063_s28 = sphi %s2123_s28, %s2436_s28   ;;  %s2059_s27 = sphi %s2121_s27, %s2435_s27   ;;  %s2055_s26 = sphi %s2119_s26, %s2434_s26   ;;  %s2051_s25 = sphi %s2117_s25, %s2433_s25   ;;  %s2047_s24 = sphi %s2115_s24, %s2432_s24  }
   0x7   : > { %p27_p0 = scmp.ge.s32.totalorder %s26_s8, 2  ;;  %p45_p1 = scmp.ne.s32.totalorder %s2051_s25, %s2047_s24 }
   0x8   : > { %p46_p2 = scmp.eq.s32.totalorder %s2071_s30, 0  ;;  %s38_s13 = sadd.s32 1, %s2051_s25 }
   0x9   : > { %s2439_s8 = smov (%p27_p0, %s26_s8), 0  ;;  %s2441_s9 = smov (!%p27_p0, %s29_s9), %s2067_s29 }
   0xa   : > { %2427 = sst [smem:[#allocation5_spill]] %s2439_s8  ;;  %p47_p3 = por %p46_p2, %p45_p1 }
   0xb   : > { %p31_p4 = scmp.ge.s32.totalorder %s2441_s9, 2  ;;  %s34_s10 = ssub.s32 %s2063_s28, %s2439_s8 }
   0xc   : > { %p1586_p6 = scmp.ge.s32.totalorder %s2071_s30, 4 }
   0xd   : > { %s2443_s9 = smov (%p31_p4, %s2441_s9), 0 }
   0xe   : > { %2428 = sst [smem:[#allocation6_spill]] %s2443_s9  ;;  %s33_s11 = ssub.s32 %s2067_s29, %s2443_s9 }
   0xf   : > { %s35_s12 = sor.u32 %s34_s10, %s33_s11  ;;  %247 = sbr.rel (%p1586_p6) target bundleno = 34 (0x22), region = 28 }
  0x10   : > { %p36_p5 = scmp.eq.s32.totalorder %s35_s12, 0 }
  0x12   : > { %s2166_s14 = scalar_select %p36_p5, %s2051_s25, %s38_s13  }
  0x16   : > { %250 = sbr.rel (!%p47_p3) target bundleno = 34 (0x22), region = 32  ;;  %s252_s15 = sand.u32 (%p47_p3), 1, %s2051_s25  }
  0x17   : > { %s1653_s16 = sshll.u32 (%p47_p3), %s2067_s29, 3  ;;  %s1587_s17 = sshll.u32 (%p47_p3), %s252_s15, 5 }
  0x18   : > { %s257_s18 = sadd.s32 (%p47_p3), %s2063_s28, %s1653_s16  ;;  %s2429_s0 = sld [smem:[#allocation7_spill]] (%p47_p3) }
  0x19   : > { %s1590_s19 = sshll.u32 (%p47_p3), %s257_s18, 3  ;;  %s254_s23 = scalar_lea.vmem (%p47_p3), [#allocation4], %s1587_s17 }
  0x1e   : > { %s259_s22 = scalar_lea.vmem %s2429_s0, %s1590_s19 }
  0x1f   : > { %v293_v0 = vld [vmem:[%s259_s22] sm:$0xff]  ;;  %v295_v1 = vld [vmem:[%s259_s22 + $0x10] sm:$0xff] }
  0x20   : > { %v297_v2 = vld [vmem:[%s259_s22 + $0x20] sm:$0xff]  ;;  %294 = vst [vmem:[%s254_s23] sm:$0xff] %v293_v0  ;;  %296 = vst [vmem:[%s254_s23 + $0x8] sm:$0xff] %v295_v1  ;;  %v299_v3 = vld [vmem:[%s259_s22 + $0x30] sm:$0xff] }
  0x21   : > { %298 = vst [vmem:[%s254_s23 + $0x10] sm:$0xff] %v297_v2  ;;  %300 = vst [vmem:[%s254_s23 + $0x18] sm:$0xff] %v299_v3 }
  0x22 PF: > { %p1591_p7 = scmp.ge.s32.totalorder %s2071_s30, 1  ;;  %p329_p8 = scmp.lt.s32.totalorder %s2071_s30, 5 }
  0x24   : > { %p330_p9 = pnand %p1591_p7, %p329_p8 }
  0x25   : > { %s336_s10 = sand.u32 (!%p330_p9), 1, %s2047_s24   ;;  %p381_p10 = scmp.lt.s32.totalorder (!%p330_p9), %s2055_s26, 1 }
  0x26   : > { %333 = sbr.rel (%p330_p9) target bundleno = 699 (0x2bb), region = 82  ;;  %s1592_s11 = sshll.u32 (!%p330_p9), %s336_s10, 5 }
  0x27   : > { %s1593_s12 = sshll.u32 (!%p330_p9), %s2055_s26, 4  ;;  %s1595_s18 = sshll.u32 (!%p330_p9), %s2059_s27, 4 }
  0x28   : > { %p385_p11 = scmp.lt.s32.totalorder (!%p330_p9), %s1593_s12, 31  ;;  %p391_p12 = scmp.lt.s32.totalorder (!%p330_p9), %s1595_s18, 31 }
  0x29   : > { %s2203_s27 = scalar_lea.vmem (!%p330_p9), [#allocation4], %s1592_s11  ;;  %p1599_p13 = scmp.ne.s32.totalorder (!%p330_p9), %s2055_s26, 0 }
  0x2d   : > { %s2181_s13 = scalar_select %p381_p10, %s2055_s26, 1 }
  0x2e   : > { %s2445_s12 = smov (!%p385_p11, %s1593_s12), 31  ;;  %s2447_s18 = smov (!%p391_p12, %s1595_s18), 31 }
  0x2f   : > { %s383_s17 = scalar_lea.vmem %s2417_s1, %s2181_s13  ;;  %s1594_s19 = sshll.u32 %s2445_s12, 2  ;;  %vm423_vm0 = vcmask (!%p1599_p13), 7168   ;;  %v2073_v4 = vmov (!%p1599_p13), 0.0  }
  0x30   : > { %s2191_s22 = scalar_lea.vmem %s2418_s2, %s1594_s19  ;;  %s1596_s24 = sshll.u32 %s2447_s18, 2  ;;  %407 = vst [vmem:[#allocation2] sm:$0xff] (!%p1599_p13), %v2073_v4  ;;  %408 = vst [vmem:[#allocation2 + $0x8] sm:$0xff] (!%p1599_p13), %v2073_v4 }
  0x31   : > { %s2196_s0 = scalar_lea.vmem %s2419_s3, %s1596_s24  ;;  %s2201_s15 = scalar_lea.vmem %s2423_s7, %s1596_s24  ;;  %409 = vst [vmem:[#allocation2 + $0x10] sm:$0xff] (!%p1599_p13), %v2073_v4  ;;  %410 = vst [vmem:[#allocation2 + $0x18] sm:$0xff] (!%p1599_p13), %v2073_v4 }
  0x32   : > { %406 = sbr.rel (%p1599_p13) target bundleno = 64 (0x40), region = 90  ;;  %411 = vst [vmem:[#allocation2 + $0x20] sm:$0xff] (!%p1599_p13), %v2073_v4  ;;  %412 = vst [vmem:[#allocation2 + $0x28] sm:$0xff] (!%p1599_p13), %v2073_v4 }
  0x33   : > { %413 = vst [vmem:[#allocation2 + $0x30] sm:$0xff] (!%p1599_p13), %v2073_v4  ;;  %414 = vst [vmem:[#allocation2 + $0x38] sm:$0xff] (!%p1599_p13), %v2073_v4 }
  0x34   : > { %415 = vst [vmem:[#allocation2 + $0x40] sm:$0xff] (!%p1599_p13), %v2073_v4  ;;  %416 = vst [vmem:[#allocation2 + $0x48] sm:$0xff] (!%p1599_p13), %v2073_v4 }
  0x35   : > { %417 = vst [vmem:[#allocation2 + $0x50] sm:$0xff] (!%p1599_p13), %v2073_v4  ;;  %418 = vst [vmem:[#allocation2 + $0x58] sm:$0xff] (!%p1599_p13), %v2073_v4 }
  0x36   : > { %419 = vst [vmem:[#allocation2 + $0x60] sm:$0xff] (!%p1599_p13), %v2073_v4  ;;  %420 = vst [vmem:[#allocation2 + $0x68] sm:$0xff] (!%p1599_p13), %v2073_v4 }
  0x37   : > { %421 = vst [vmem:[#allocation2 + $0x70] sm:$0xff] (!%p1599_p13), %v2073_v4  ;;  %422 = vst [vmem:[#allocation2 + $0x78] sm:$0xff] (!%p1599_p13), %v2073_v4 }
  0x38   : > { %424 = vst.msk [vmem:[#allocation3] sm:$0xff] (!%p1599_p13), %vm423_vm0, %v2073_v4  ;;  %425 = vst.msk [vmem:[#allocation3 + $0x8] sm:$0xff] (!%p1599_p13), %vm423_vm0, %v2073_v4 }
  0x39   : > { %426 = vst.msk [vmem:[#allocation3 + $0x10] sm:$0xff] %vm423_vm0, %v2073_v4  ;;  %427 = vst.msk [vmem:[#allocation3 + $0x18] sm:$0xff] %vm423_vm0, %v2073_v4 }
  0x3a   : > { %428 = vst.msk [vmem:[#allocation3 + $0x20] sm:$0xff] %vm423_vm0, %v2073_v4  ;;  %429 = vst.msk [vmem:[#allocation3 + $0x28] sm:$0xff] %vm423_vm0, %v2073_v4 }
  0x3b   : > { %430 = vst.msk [vmem:[#allocation3 + $0x30] sm:$0xff] %vm423_vm0, %v2073_v4  ;;  %431 = vst.msk [vmem:[#allocation3 + $0x38] sm:$0xff] %vm423_vm0, %v2073_v4 }
  0x3c   : > { %432 = vst.msk [vmem:[#allocation3 + $0x40] sm:$0xff] %vm423_vm0, %v2073_v4  ;;  %433 = vst.msk [vmem:[#allocation3 + $0x48] sm:$0xff] %vm423_vm0, %v2073_v4 }
  0x3d   : > { %434 = vst.msk [vmem:[#allocation3 + $0x50] sm:$0xff] %vm423_vm0, %v2073_v4  ;;  %435 = vst.msk [vmem:[#allocation3 + $0x58] sm:$0xff] %vm423_vm0, %v2073_v4 }
  0x3e   : > { %436 = vst.msk [vmem:[#allocation3 + $0x60] sm:$0xff] %vm423_vm0, %v2073_v4  ;;  %437 = vst.msk [vmem:[#allocation3 + $0x68] sm:$0xff] %vm423_vm0, %v2073_v4 }
  0x3f   : > { %438 = vst.msk [vmem:[#allocation3 + $0x70] sm:$0xff] %vm423_vm0, %v2073_v4  ;;  %439 = vst.msk [vmem:[#allocation3 + $0x78] sm:$0xff] %vm423_vm0, %v2073_v4 }
  0x40 PF: > { %v1951_v5 = vld [vmem:[%s2191_s22] sm:$0xff]   ;;  %v1952_v6 = vld [vmem:[%s2191_s22 + $0x8] sm:$0xff]   ;;  %v1953_v7 = vld [vmem:[%s2191_s22 + $0x10] sm:$0xff]   ;;  %vm780_vm1 = vcmask 7168   ;;  %p1609_p0 = scmp.ne.s32.totalorder %s2055_s26, 1 }
  0x41   : > { %1765 = vmatprep.subr.bf16.mxu0 %v1951_v5  ;;  %1861 = vmatprep.subr.bf16.mxu1 %v1951_v5  ;;  %v1954_v8 = vld [vmem:[%s2191_s22 + $0x18] sm:$0xff]   ;;  %v2227_v9 = vld [vmem:[%s2203_s27] sm:$0xff]  ;;  %v2235_v13 = vld [vmem:[%s2203_s27 + $0x8] sm:$0xff] }
  0x42   : > { %1766 = vmatpush3.bf16.msra.mxu0 %v1951_v5  ;;  %1869 = vmatpush3.bf16.msra.mxu1 %v1951_v5  ;;  %v2230_v10 = vld [vmem:[%s2203_s27 + $0x10] sm:$0xff]  ;;  %v492_v11 = vunpack.c.l.s8.bf16 %v2227_v9  ;;  %v446_v14 = vunpack.c.2.s8 %v2227_v9  ;;  %v444_v15 = vunpack.c.0.s8 %v2227_v9  ;;  %v447_v16 = vunpack.c.3.s8 %v2227_v9  ;;  %v1955_v18 = vld [vmem:[%s2191_s22 + $0x20] sm:$0xff]   ;;  %v1956_v28 = vld [vmem:[%s2191_s22 + $0x28] sm:$0xff]  }
  0x43   : > { %1767 = vmatprep.subr.bf16.mxu0 %v1952_v6  ;;  %1862 = vmatprep.subr.bf16.mxu1 %v1952_v6  ;;  %v496_v12 = vunpack.c.l.s8.bf16 %v2230_v10  ;;  %v445_v17 = vunpack.c.1.s8 %v2227_v9  ;;  %v2247_v19 = vld [vmem:[%s383_s17] ss:$0 sm:$0xff]  ;;  %v449_v20 = vunpack.c.1.s8 %v2235_v13  ;;  %v448_v21 = vunpack.c.0.s8 %v2235_v13  ;;  %v1957_v35 = vld [vmem:[%s2191_s22 + $0x30] sm:$0xff]   ;;  %v1958_v42 = vld [vmem:[%s2191_s22 + $0x38] sm:$0xff]  }
  0x44   : > { %1781 = vmatprep.mubr.bf16.mxu0 %v492_v11  ;;  %v462_v22 = vcvt.s32.f32 %v446_v14  ;;  %v460_v23 = vcvt.s32.f32 %v444_v15  ;;  %v463_v24 = vcvt.s32.f32 %v447_v16  ;;  %v451_v29 = vunpack.c.3.s8 %v2235_v13  ;;  %v443_v49 = vld [vmem:[%s2203_s27 + $0x18] sm:$0xff] }
  0x45   : > { %1789 = vmatprep.mubr.bf16.mxu1 %v496_v12  ;;  %v461_v25 = vcvt.s32.f32 %v445_v17  ;;  %v450_v30 = vunpack.c.2.s8 %v2235_v13  ;;  %v465_v33 = vcvt.s32.f32 %v449_v20  ;;  %v464_v34 = vcvt.s32.f32 %v448_v21 }
  0x46   : > { %1768 = vmatpush3.bf16.msra.mxu0 %v1952_v6  ;;  %1870 = vmatpush3.bf16.msra.mxu1 %v1952_v6  ;;  %v718_v26 = vmul.f32 %v2247_v19, %v462_v22  ;;  %v716_v27 = vmul.f32 %v2247_v19, %v460_v23  ;;  %v719_v31 = vmul.f32 %v2247_v19, %v463_v24  ;;  %v467_v36 = vcvt.s32.f32 %v451_v29  ;;  %v693_v11 = vld [vmem:[#allocation3] sm:$0xff]  ;;  %v698_v22 = vld [vmem:[#allocation3 + $0x28] sm:$0xff]  ;;  %v699_v29 = vld [vmem:[#allocation3 + $0x30] sm:$0xff] }
  0x47   : > { %1769 = vmatprep.subr.bf16.mxu0 %v1953_v7  ;;  %1863 = vmatprep.subr.bf16.mxu1 %v1953_v7  ;;  %v717_v32 = vmul.f32 %v2247_v19, %v461_v25  ;;  %v466_v37 = vcvt.s32.f32 %v450_v30  ;;  %v721_v38 = vmul.f32 %v2247_v19, %v465_v33  ;;  %v720_v39 = vmul.f32 %v2247_v19, %v464_v34  ;;  %v696_v17 = vld [vmem:[#allocation3 + $0x18] sm:$0xff]  ;;  %v697_v23 = vld [vmem:[#allocation3 + $0x20] sm:$0xff]  ;;  %v702_v34 = vld [vmem:[#allocation3 + $0x48] sm:$0xff] }
  0x48   : > { %736 = vadd.xlane.f32.xlu1 %v718_v26  ;;  %732 = vadd.xlane.f32.xlu0 %v716_v27  ;;  %v453_v40 = vunpack.c.1.s8 %v2230_v10  ;;  %v452_v41 = vunpack.c.0.s8 %v2230_v10  ;;  %v723_v43 = vmul.f32 %v2247_v19, %v467_v36  ;;  %v455_v47 = vunpack.c.3.s8 %v2230_v10 }
  0x49   : > { %v722_v44 = vmul.f32 %v2247_v19, %v466_v37  ;;  %v454_v48 = vunpack.c.2.s8 %v2230_v10  ;;  %v457_v50 = vunpack.c.1.s8 %v443_v49  ;;  %v456_v51 = vunpack.c.0.s8 %v443_v49 }
  0x4a   : > { %1770 = vmatpush3.bf16.msra.mxu0 %v1953_v7  ;;  %1871 = vmatpush3.bf16.msra.mxu1 %v1953_v7  ;;  %v469_v45 = vcvt.s32.f32 %v453_v40  ;;  %v468_v46 = vcvt.s32.f32 %v452_v41  ;;  %v471_v54 = vcvt.s32.f32 %v455_v47  ;;  %v493_v56 = vunpack.c.h.s8.bf16 %v2227_v9  ;;  %v704_v40 = vld [vmem:[#allocation3 + $0x58] sm:$0xff]  ;;  %v703_v41 = vld [vmem:[#allocation3 + $0x50] sm:$0xff]  ;;  %v705_v47 = vld [vmem:[#allocation3 + $0x60] sm:$0xff] }
  0x4b   : > { %1771 = vmatprep.subr.bf16.mxu0 %v1954_v8  ;;  %1864 = vmatprep.subr.bf16.mxu1 %v1954_v8  ;;  %v470_v55 = vcvt.s32.f32 %v454_v48  ;;  %v497_v57 = vunpack.c.h.s8.bf16 %v2230_v10  ;;  %v494_v58 = vunpack.c.l.s8.bf16 %v2235_v13  ;;  %v498_v59 = vunpack.c.l.s8.bf16 %v443_v49  ;;  %v695_v10 = vld [vmem:[#allocation3 + $0x10] sm:$0xff] }
  0x4c   : > { %738 = vadd.xlane.f32.xlu1 %v719_v31  ;;  %734 = vadd.xlane.f32.xlu0 %v717_v32  ;;  %v725_v52 = vmul.f32 %v2247_v19, %v469_v45  ;;  %v724_v53 = vmul.f32 %v2247_v19, %v468_v46  ;;  %v459_v60 = vunpack.c.3.s8 %v443_v49  ;;  %v458_v61 = vunpack.c.2.s8 %v443_v49  ;;  %v706_v46 = vld [vmem:[#allocation3 + $0x68] sm:$0xff] }
  0x4d   : > { %v727_v62 = vmul.f32 %v2247_v19, %v471_v54  ;;  %v726_v63 = vmul.f32 %v2247_v19, %v470_v55  ;;  %v473_v0 = vcvt.s32.f32 %v457_v50  ;;  %v472_v1 = vcvt.s32.f32 %v456_v51 }
  0x4e   : > { %1772 = vmatpush3.bf16.msra.mxu0 %v1954_v8  ;;  %1872 = vmatpush3.bf16.msra.mxu1 %v1954_v8  ;;  %v475_v4 = vcvt.s32.f32 %v459_v60  ;;  %v474_v5 = vcvt.s32.f32 %v458_v61  ;;  %v495_v6 = vunpack.c.h.s8.bf16 %v2235_v13  ;;  %v499_v7 = vunpack.c.h.s8.bf16 %v443_v49  ;;  %v694_v13 = vld [vmem:[#allocation3 + $0x8] sm:$0xff]  ;;  %v476_v60 = vld [vmem:[#allocation2] sm:$0xff] }
  0x4f   : > { %1773 = vmatprep.subr.bf16.mxu0 %v1955_v18  ;;  %1865 = vmatprep.subr.bf16.mxu1 %v1955_v18  ;;  %v729_v2 = vmul.f32 %v2247_v19, %v473_v0  ;;  %v728_v3 = vmul.f32 %v2247_v19, %v472_v1  ;;  %v484_v61 = vld [vmem:[#allocation2 + $0x40] sm:$0xff]  ;;  %v479_v0 = vld [vmem:[#allocation2 + $0x18] sm:$0xff] }
  0x50   : > { %742 = vadd.xlane.f32.xlu1 %v721_v38  ;;  %740 = vadd.xlane.f32.xlu0 %v720_v39  ;;  %v731_v8 = vmul.f32 %v2247_v19, %v475_v4  ;;  %v730_v9 = vmul.f32 %v2247_v19, %v474_v5  ;;  %v487_v1 = vld [vmem:[#allocation2 + $0x58] sm:$0xff] }
  0x52   : > { %1774 = vmatpush3.bf16.msra.mxu0 %v1955_v18  ;;  %1873 = vmatpush3.bf16.msra.mxu1 %v1955_v18 }
  0x53   : > { %1775 = vmatprep.subr.bf16.mxu0 %v1956_v28  ;;  %1866 = vmatprep.subr.bf16.mxu1 %v1956_v28 }
  0x54   : > { %746 = vadd.xlane.f32.xlu1 %v723_v43  ;;  %744 = vadd.xlane.f32.xlu0 %v722_v44 }
  0x56   : > { %1776 = vmatpush3.bf16.msra.mxu0 %v1956_v28  ;;  %1874 = vmatpush3.bf16.msra.mxu1 %v1956_v28  ;;  %v700_v28 = vld [vmem:[#allocation3 + $0x38] sm:$0xff] }
  0x57   : > { %1777 = vmatprep.subr.bf16.mxu0 %v1957_v35  ;;  %1867 = vmatprep.subr.bf16.mxu1 %v1957_v35 }
  0x58   : > { %750 = vadd.xlane.f32.xlu1 %v725_v52  ;;  %748 = vadd.xlane.f32.xlu0 %v724_v53  ;;  %v708_v52 = vld [vmem:[#allocation3 + $0x78] sm:$0xff]  ;;  %v707_v53 = vld [vmem:[#allocation3 + $0x70] sm:$0xff] }
  0x5a   : > { %1778 = vmatpush3.bf16.msra.mxu0 %v1957_v35  ;;  %1875 = vmatpush3.bf16.msra.mxu1 %v1957_v35  ;;  %v701_v35 = vld [vmem:[#allocation3 + $0x40] sm:$0xff] }
  0x5b   : > { %1779 = vmatprep.subr.bf16.mxu0 %v1958_v42  ;;  %1868 = vmatprep.subr.bf16.mxu1 %v1958_v42 }
  0x5c   : > { %754 = vadd.xlane.f32.xlu1 %v727_v62  ;;  %752 = vadd.xlane.f32.xlu0 %v726_v63 }
  0x5e   : > { %1780 = vmatpush3.bf16.msra.mxu0 %v1958_v42  ;;  %1876 = vmatpush3.bf16.msra.mxu1 %v1958_v42 }
  0x60   : > { %758 = vadd.xlane.f32.xlu1 %v729_v2  ;;  %756 = vadd.xlane.f32.xlu0 %v728_v3 }
  0x61   : > { %1782 = vmatmul.mubr.bf16.vlgmr.msra.gmra.mrb[0].mxu0 %v493_v56  ;;  %1790 = vmatmul.mubr.bf16.vlgmr.msra.gmra.mrb[0].mxu1 %v497_v57 }
  0x62   : > { %1785 = vmatprep.mubr.bf16.mxu0 %v494_v58  ;;  %1793 = vmatprep.mubr.bf16.mxu1 %v498_v59  ;;  %v478_v58 = vld [vmem:[#allocation2 + $0x10] sm:$0xff] }
  0x63   : > { %v486_v59 = vld [vmem:[#allocation2 + $0x50] sm:$0xff] }
  0x64   : > { %762 = vadd.xlane.f32.xlu1 %v731_v8  ;;  %760 = vadd.xlane.f32.xlu0 %v730_v9 }
  0x69   : > { %1786 = vmatmul.mubr.bf16.gmra.mrb[4].mxu0 %v495_v6  ;;  %1794 = vmatmul.mubr.bf16.gmra.mrb[4].mxu1 %v499_v7  ;;  %v477_v6 = vld [vmem:[#allocation2 + $0x8] sm:$0xff] }
  0x6a   : > { %v485_v7 = vld [vmem:[#allocation2 + $0x48] sm:$0xff] }
  0xd5   : > { %v737_v12 = vpop.xlane.xlu1 %736  ;;  %v733_v14 = vpop.xlane.xlu0 %732 }
  0xd6   : > { %v766_v15 = vadd.f32 %v737_v12, %v695_v10  ;;  %v764_v16 = vadd.f32 %v733_v14, %v693_v11 }
  0xd8   : > { %783 = vst.msk [vmem:[#allocation3 + $0x10] sm:$0xff] %vm780_vm1, %v766_v15  ;;  %781 = vst.msk [vmem:[#allocation3] sm:$0xff] %vm780_vm1, %v764_v16 }
  0xd9   : > { %v739_v18 = vpop.xlane.xlu1 %738  ;;  %v735_v20 = vpop.xlane.xlu0 %734 }
  0xda   : > { %v767_v19 = vadd.f32 %v739_v18, %v696_v17  ;;  %v765_v21 = vadd.f32 %v735_v20, %v694_v13  ;;  %v482_v18 = vld [vmem:[#allocation2 + $0x30] sm:$0xff] }
  0xdb   : > { %v490_v20 = vld [vmem:[#allocation2 + $0x70] sm:$0xff] }
  0xdc   : > { %784 = vst.msk [vmem:[#allocation3 + $0x18] sm:$0xff] %vm780_vm1, %v767_v19  ;;  %782 = vst.msk [vmem:[#allocation3 + $0x8] sm:$0xff] %vm780_vm1, %v765_v21  ;;  %v480_v19 = vld [vmem:[#allocation2 + $0x20] sm:$0xff] }
  0xdd   : > { %v743_v24 = vpop.xlane.xlu1 %742  ;;  %v741_v25 = vpop.xlane.xlu0 %740  ;;  %v488_v21 = vld [vmem:[#allocation2 + $0x60] sm:$0xff] }
  0xde   : > { %v769_v26 = vadd.f32 %v743_v24, %v698_v22  ;;  %v768_v27 = vadd.f32 %v741_v25, %v697_v23  ;;  %v483_v24 = vld [vmem:[#allocation2 + $0x38] sm:$0xff] }
  0xdf   : > { %v491_v25 = vld [vmem:[#allocation2 + $0x78] sm:$0xff] }
  0xe0   : > { %786 = vst.msk [vmem:[#allocation3 + $0x28] sm:$0xff] %vm780_vm1, %v769_v26  ;;  %785 = vst.msk [vmem:[#allocation3 + $0x20] sm:$0xff] %vm780_vm1, %v768_v27 }
  0xe1   : > { %v747_v30 = vpop.xlane.xlu1 %746  ;;  %v745_v31 = vpop.xlane.xlu0 %744 }
  0xe2   : > { %v771_v32 = vadd.f32 %v747_v30, %v700_v28  ;;  %v770_v33 = vadd.f32 %v745_v31, %v699_v29  ;;  %v481_v30 = vld [vmem:[#allocation2 + $0x28] sm:$0xff] }
  0xe3   : > { %v489_v31 = vld [vmem:[#allocation2 + $0x68] sm:$0xff] }
  0xe4   : > { %788 = vst.msk [vmem:[#allocation3 + $0x38] sm:$0xff] %vm780_vm1, %v771_v32  ;;  %787 = vst.msk [vmem:[#allocation3 + $0x30] sm:$0xff] %vm780_vm1, %v770_v33 }
  0xe5   : > { %v751_v36 = vpop.xlane.xlu1 %750  ;;  %v749_v37 = vpop.xlane.xlu0 %748 }
  0xe6   : > { %v773_v38 = vadd.f32 %v751_v36, %v702_v34  ;;  %v772_v39 = vadd.f32 %v749_v37, %v701_v35 }
  0xe8   : > { %790 = vst.msk [vmem:[#allocation3 + $0x48] sm:$0xff] %vm780_vm1, %v773_v38  ;;  %789 = vst.msk [vmem:[#allocation3 + $0x40] sm:$0xff] %vm780_vm1, %v772_v39 }
  0xe9   : > { %v755_v42 = vpop.xlane.xlu1 %754  ;;  %v753_v43 = vpop.xlane.xlu0 %752 }
  0xea   : > { %v775_v44 = vadd.f32 %v755_v42, %v704_v40  ;;  %v774_v45 = vadd.f32 %v753_v43, %v703_v41  ;;  %v803_v42 = vld [vmem:[#allocation3 + $0x10] sm:$0xff] (!%p1609_p0)  ;;  %v801_v43 = vld [vmem:[#allocation3] sm:$0xff] (!%p1609_p0) }
  0xec   : > { %792 = vst.msk [vmem:[#allocation3 + $0x58] sm:$0xff] %vm780_vm1, %v775_v44  ;;  %791 = vst.msk [vmem:[#allocation3 + $0x50] sm:$0xff] %vm780_vm1, %v774_v45  ;;  %v804_v44 = vld [vmem:[#allocation3 + $0x18] sm:$0xff] (!%p1609_p0)  ;;  %v2074_v45 = vmov (!%p1609_p0), 0  }
  0xed   : > { %v759_v48 = vpop.xlane.xlu1 %758  ;;  %v757_v49 = vpop.xlane.xlu0 %756  ;;  %1960 = vset.pattern.permute.xlu1 (!%p1609_p0), %v2074_v45  ;;  %1959 = vset.pattern.permute.xlu0 (!%p1609_p0), %v2074_v45 }
  0xee   : > { %v777_v50 = vadd.f32 %v759_v48, %v706_v46  ;;  %v776_v51 = vadd.f32 %v757_v49, %v705_v47  ;;  %v819_v46 = vmax.f32 (!%p1609_p0), %v803_v42, 1.0  ;;  %v817_v47 = vmax.f32 (!%p1609_p0), %v801_v43, 1.0  ;;  %v802_v49 = vld [vmem:[#allocation3 + $0x8] sm:$0xff] (!%p1609_p0)  ;;  %v1978_v42 = vld [vmem:[%s2196_s0 + $0x8] sm:$0xff] (!%p1609_p0)  }
  0xef   : > { %v820_v48 = vmax.f32 (!%p1609_p0), %v804_v44, 1.0  ;;  %v1979_v43 = vld [vmem:[%s2196_s0 + $0x10] sm:$0xff] (!%p1609_p0)  }
  0xf0   : > { %794 = vst.msk [vmem:[#allocation3 + $0x68] sm:$0xff] %vm780_vm1, %v777_v50  ;;  %793 = vst.msk [vmem:[#allocation3 + $0x60] sm:$0xff] %vm780_vm1, %v776_v51  ;;  %v818_v50 = vmax.f32 (!%p1609_p0), %v802_v49, 1.0  ;;  %v806_v51 = vld [vmem:[#allocation3 + $0x28] sm:$0xff] (!%p1609_p0)  ;;  %1985 = vrcp.f32 (!%p1609_p0), %v819_v46  ;;  %v1980_v46 = vld [vmem:[%s2196_s0 + $0x18] sm:$0xff] (!%p1609_p0)  }
  0xf1   : > { %v763_v54 = vpop.xlane.xlu1 %762  ;;  %v761_v55 = vpop.xlane.xlu0 %760  ;;  %1987 = vrcp.f32 (!%p1609_p0), %v817_v47  ;;  %v1981_v47 = vld [vmem:[%s2196_s0 + $0x20] sm:$0xff] (!%p1609_p0)   ;;  %v1983_v49 = vld [vmem:[%s2196_s0 + $0x30] sm:$0xff] (!%p1609_p0)  }
  0xf2   : > { %v779_v56 = vadd.f32 %v763_v54, %v708_v52  ;;  %v778_v57 = vadd.f32 %v761_v55, %v707_v53  ;;  %v805_v52 = vld [vmem:[#allocation3 + $0x20] sm:$0xff] (!%p1609_p0)  ;;  %1989 = vrcp.f32 (!%p1609_p0), %v820_v48  ;;  %v822_v53 = vmax.f32 (!%p1609_p0), %v806_v51, 1.0  ;;  %v808_v54 = vld [vmem:[#allocation3 + $0x38] sm:$0xff] (!%p1609_p0)  ;;  %v807_v55 = vld [vmem:[#allocation3 + $0x30] sm:$0xff] (!%p1609_p0) }
  0xf3   : > { %1991 = vrcp.f32 (!%p1609_p0), %v818_v50  ;;  %v1982_v48 = vld [vmem:[%s2196_s0 + $0x28] sm:$0xff] (!%p1609_p0)   ;;  %v1984_v50 = vld [vmem:[%s2196_s0 + $0x38] sm:$0xff] (!%p1609_p0)  }
  0xf4   : > { %796 = vst.msk [vmem:[#allocation3 + $0x78] sm:$0xff] %vm780_vm1, %v779_v56  ;;  %795 = vst.msk [vmem:[#allocation3 + $0x70] sm:$0xff] %vm780_vm1, %v778_v57  ;;  %v821_v56 = vmax.f32 (!%p1609_p0), %v805_v52, 1.0  ;;  %v1961_v57 = vld [vmem:[%s2421_s5] sm:$0xff] (!%p1609_p0)   ;;  %1993 = vrcp.f32 (!%p1609_p0), %v822_v53 }
  0xf5   : > { %1797 = vmatprep.subr.bf16.mxu1 (!%p1609_p0), %v1961_v57 }
  0xf6   : > { %1798 = vmatpush3.bf16.msra.mxu1 (!%p1609_p0), %v1961_v57  ;;  %1995 = vrcp.f32 (!%p1609_p0), %v821_v56 }
 0x134   : > { %v1783_v62 = vpop.f32.mrb[0].mxu0  ;;  %v1791_v63 = vpop.f32.mrb[0].mxu1 }
 0x135   : > { %v663_v2 = vadd.f32 %v1783_v62, %v478_v58  ;;  %v671_v3 = vadd.f32 %v1791_v63, %v486_v59  ;;  %v598_v4 = vpop.f32.mrb[1].mxu0  ;;  %v630_v5 = vpop.f32.mrb[1].mxu1  ;;  %v1962_v58 = vld [vmem:[%s2420_s4] sm:$0xff] (!%p1609_p0)   ;;  %v810_v59 = vld [vmem:[#allocation3 + $0x48] sm:$0xff] (!%p1609_p0)  ;;  %v1964_v62 = vld [vmem:[%s2420_s4 + $0x8] sm:$0xff] (!%p1609_p0)   ;;  %v823_v63 = vmax.f32 (!%p1609_p0), %v807_v55, 1.0 }
 0x136   : > { %v661_v8 = vadd.f32 %v598_v4, %v476_v60  ;;  %v669_v9 = vadd.f32 %v630_v5, %v484_v61  ;;  %v1784_v10 = vpop.f32.mrb[2].mxu0  ;;  %v1792_v11 = vpop.f32.mrb[2].mxu1  ;;  %v1963_v60 = vld [vmem:[%s2421_s5 + $0x8] sm:$0xff] (!%p1609_p0)   ;;  %v824_v61 = vmax.f32 (!%p1609_p0), %v808_v54, 1.0  ;;  %1829 = vmatprep.subr.bf16.mxu0 (!%p1609_p0), %v1962_v58  ;;  %v826_v4 = vmax.f32 (!%p1609_p0), %v810_v59, 1.0  ;;  %v812_v5 = vld [vmem:[#allocation3 + $0x58] sm:$0xff] (!%p1609_p0) }
 0x137   : > { %679 = vst [vmem:[#allocation2 + $0x10] sm:$0xff] %v663_v2  ;;  %687 = vst [vmem:[#allocation2 + $0x50] sm:$0xff] %v671_v3  ;;  %v664_v12 = vadd.f32 %v1784_v10, %v479_v0  ;;  %v672_v14 = vadd.f32 %v1792_v11, %v487_v1  ;;  %v601_v15 = vpop.f32.mrb[3].mxu0  ;;  %v633_v16 = vpop.f32.mrb[3].mxu1  ;;  %1799 = vmatprep.subr.bf16.mxu1 (!%p1609_p0), %v1963_v60  ;;  %1830 = vmatpush3.bf16.msra.mxu0 (!%p1609_p0), %v1962_v58  ;;  %v1965_v0 = vld [vmem:[%s2421_s5 + $0x10] sm:$0xff] (!%p1609_p0)   ;;  %v809_v1 = vld [vmem:[#allocation3 + $0x40] sm:$0xff] (!%p1609_p0) }
 0x138   : > { %677 = vst [vmem:[#allocation2] sm:$0xff] %v661_v8  ;;  %685 = vst [vmem:[#allocation2 + $0x40] sm:$0xff] %v669_v9  ;;  %v662_v17 = vadd.f32 %v601_v15, %v477_v6  ;;  %v670_v13 = vadd.f32 %v633_v16, %v485_v7  ;;  %1831 = vmatprep.subr.bf16.mxu0 (!%p1609_p0), %v1964_v62  ;;  %v1966_v2 = vld [vmem:[%s2420_s4 + $0x10] sm:$0xff] (!%p1609_p0)   ;;  %v1986_v3 = vpop.eup (!%p1609_p0), %1985  ;;  %1997 = vrcp.f32 (!%p1609_p0), %v824_v61  ;;  %1800 = vmatpush3.bf16.msra.mxu1 (!%p1609_p0), %v1963_v60  ;;  %v1967_v8 = vld [vmem:[%s2421_s5 + $0x18] sm:$0xff] (!%p1609_p0)  }
 0x139   : > { %680 = vst [vmem:[#allocation2 + $0x18] sm:$0xff] %v664_v12  ;;  %688 = vst [vmem:[#allocation2 + $0x58] sm:$0xff] %v672_v14  ;;  %v1988_v6 = vpop.eup (!%p1609_p0), %1987  ;;  %877 = vperm.xlu1 (!%p1609_p0), %1960, %v1986_v3   ;;  %1999 = vrcp.f32 (!%p1609_p0), %v823_v63  ;;  %v825_v7 = vmax.f32 (!%p1609_p0), %v809_v1, 1.0  ;;  %1801 = vmatprep.subr.bf16.mxu1 (!%p1609_p0), %v1965_v0  ;;  %v811_v10 = vld [vmem:[#allocation3 + $0x50] sm:$0xff] (!%p1609_p0)  ;;  %v828_v14 = vmax.f32 (!%p1609_p0), %v812_v5, 1.0  ;;  %v814_v16 = vld [vmem:[#allocation3 + $0x68] sm:$0xff] (!%p1609_p0) }
 0x13a   : > { %678 = vst [vmem:[#allocation2 + $0x8] sm:$0xff] %v662_v17  ;;  %686 = vst [vmem:[#allocation2 + $0x48] sm:$0xff] %v670_v13  ;;  %v1990_v9 = vpop.eup (!%p1609_p0), %1989  ;;  %867 = vperm.xlu0 (!%p1609_p0), %1959, %v1988_v6   ;;  %v1968_v12 = vld [vmem:[%s2420_s4 + $0x18] sm:$0xff] (!%p1609_p0)   ;;  %2001 = vrcp.f32 (!%p1609_p0), %v826_v4  ;;  %v827_v15 = vmax.f32 (!%p1609_p0), %v811_v10, 1.0  ;;  %v1969_v17 = vld [vmem:[%s2421_s5 + $0x20] sm:$0xff] (!%p1609_p0)  }
 0x13b   : > { %1832 = vmatpush3.bf16.msra.mxu0 (!%p1609_p0), %v1964_v62  ;;  %v1992_v11 = vpop.eup (!%p1609_p0), %1991  ;;  %2003 = vrcp.f32 (!%p1609_p0), %v825_v7 }
 0x13c   : > { %v1787_v22 = vpop.f32.mrb[4].mxu0  ;;  %v1795_v23 = vpop.f32.mrb[4].mxu1  ;;  %800 = sbr.rel (%p1609_p0) target bundleno = 699 (0x2bb), region = 94  ;;  %1833 = vmatprep.subr.bf16.mxu0 (!%p1609_p0), %v1966_v2  ;;  %1802 = vmatpush3.bf16.msra.mxu1 (!%p1609_p0), %v1965_v0  ;;  %2005 = vrcp.f32 (!%p1609_p0), %v828_v14 }
 0x13d   : > { %v667_v26 = vadd.f32 %v1787_v22, %v482_v18  ;;  %v675_v27 = vadd.f32 %v1795_v23, %v490_v20  ;;  %v614_v28 = vpop.f32.mrb[5].mxu0  ;;  %v646_v29 = vpop.f32.mrb[5].mxu1  ;;  %882 = vperm.xlu1 (!%p1609_p0), %1960, %v1990_v9   ;;  %1803 = vmatprep.subr.bf16.mxu1 (!%p1609_p0), %v1967_v8  ;;  %v813_v18 = vld [vmem:[#allocation3 + $0x60] sm:$0xff] (!%p1609_p0)  ;;  %v816_v22 = vld [vmem:[#allocation3 + $0x78] sm:$0xff] (!%p1609_p0)  ;;  %2007 = vrcp.f32 (!%p1609_p0), %v827_v15 }
 0x13e   : > { %v665_v32 = vadd.f32 %v614_v28, %v480_v19  ;;  %v673_v33 = vadd.f32 %v646_v29, %v488_v21  ;;  %v1788_v34 = vpop.f32.mrb[6].mxu0  ;;  %v1796_v35 = vpop.f32.mrb[6].mxu1  ;;  %872 = vperm.xlu0 (!%p1609_p0), %1959, %v1992_v11   ;;  %v1970_v19 = vld [vmem:[%s2420_s4 + $0x20] sm:$0xff] (!%p1609_p0)   ;;  %v830_v21 = vmax.f32 (!%p1609_p0), %v814_v16, 1.0  ;;  %v1971_v23 = vld [vmem:[%s2421_s5 + $0x28] sm:$0xff] (!%p1609_p0)   ;;  %v851_v53 = vld [vmem:[#allocation2 + $0x10] sm:$0xff] (!%p1609_p0) }
 0x13f   : > { %683 = vst [vmem:[#allocation2 + $0x30] sm:$0xff] %v667_v26  ;;  %691 = vst [vmem:[#allocation2 + $0x70] sm:$0xff] %v675_v27  ;;  %v668_v36 = vadd.f32 %v1788_v34, %v483_v24  ;;  %v676_v37 = vadd.f32 %v1796_v35, %v491_v25  ;;  %v617_v38 = vpop.f32.mrb[7].mxu0  ;;  %v649_v39 = vpop.f32.mrb[7].mxu1  ;;  %1834 = vmatpush3.bf16.msra.mxu0 (!%p1609_p0), %v1966_v2  ;;  %v829_v24 = vmax.f32 (!%p1609_p0), %v813_v18, 1.0  ;;  %v1976_v25 = vld [vmem:[%s2196_s0] sm:$0xff] (!%p1609_p0)  }
 0x140   : > { %681 = vst [vmem:[#allocation2 + $0x20] sm:$0xff] %v665_v32  ;;  %689 = vst [vmem:[#allocation2 + $0x60] sm:$0xff] %v673_v33  ;;  %v666_v40 = vadd.f32 %v617_v38, %v481_v30  ;;  %v674_v41 = vadd.f32 %v649_v39, %v489_v31  ;;  %v1994_v13 = vpop.eup (!%p1609_p0), %1993  ;;  %1835 = vmatprep.subr.bf16.mxu0 (!%p1609_p0), %v1968_v12  ;;  %1804 = vmatpush3.bf16.msra.mxu1 (!%p1609_p0), %v1967_v8  ;;  %v815_v27 = vld [vmem:[#allocation3 + $0x70] sm:$0xff] (!%p1609_p0)  ;;  %v1972_v29 = vld [vmem:[%s2420_s4 + $0x28] sm:$0xff] (!%p1609_p0)   ;;  %2009 = vrcp.f32 (!%p1609_p0), %v830_v21 }
 0x141   : > { %684 = vst [vmem:[#allocation2 + $0x38] sm:$0xff] %v668_v36  ;;  %692 = vst [vmem:[#allocation2 + $0x78] sm:$0xff] %v676_v37  ;;  %v1996_v20 = vpop.eup (!%p1609_p0), %1995  ;;  %892 = vperm.xlu1 (!%p1609_p0), %1960, %v1994_v13   ;;  %1805 = vmatprep.subr.bf16.mxu1 (!%p1609_p0), %v1969_v17  ;;  %v832_v30 = vmax.f32 (!%p1609_p0), %v816_v22, 1.0  ;;  %2011 = vrcp.f32 (!%p1609_p0), %v829_v24  ;;  %v831_v31 = vmax.f32 (!%p1609_p0), %v815_v27, 1.0  ;;  %v1973_v32 = vld [vmem:[%s2421_s5 + $0x30] sm:$0xff] (!%p1609_p0)   ;;  %v1975_v36 = vld [vmem:[%s2421_s5 + $0x38] sm:$0xff] (!%p1609_p0)  }
 0x142   : > { %682 = vst [vmem:[#allocation2 + $0x28] sm:$0xff] %v666_v40  ;;  %690 = vst [vmem:[#allocation2 + $0x68] sm:$0xff] %v674_v41  ;;  %v1998_v26 = vpop.eup (!%p1609_p0), %1997  ;;  %887 = vperm.xlu0 (!%p1609_p0), %1959, %v1996_v20   ;;  %1813 = vmatprep.mubr.bf16.mxu1 (!%p1609_p0), %v1976_v25  ;;  %v1974_v35 = vld [vmem:[%s2420_s4 + $0x30] sm:$0xff] (!%p1609_p0)   ;;  %v1977_v39 = vld [vmem:[%s2420_s4 + $0x38] sm:$0xff] (!%p1609_p0)  }
 0x143   : > { %1836 = vmatpush3.bf16.msra.mxu0 %v1968_v12  ;;  %v2000_v28 = vpop.eup %1999  ;;  %2013 = vrcp.f32 %v832_v30  ;;  %v852_v54 = vld [vmem:[#allocation2 + $0x18] sm:$0xff]  ;;  %v849_v55 = vld [vmem:[#allocation2] sm:$0xff]  ;;  %v850_v56 = vld [vmem:[#allocation2 + $0x8] sm:$0xff] }
 0x144   : > { %1837 = vmatprep.subr.bf16.mxu0 %v1970_v19  ;;  %1806 = vmatpush3.bf16.msra.mxu1 %v1969_v17  ;;  %v2002_v33 = vpop.eup %2001  ;;  %2015 = vrcp.f32 %v831_v31  ;;  %v858_v15 = vld [vmem:[#allocation2 + $0x48] sm:$0xff]  ;;  %v857_v16 = vld [vmem:[#allocation2 + $0x40] sm:$0xff]  ;;  %v860_v21 = vld [vmem:[#allocation2 + $0x58] sm:$0xff] }
 0x145   : > { %902 = vperm.xlu1 %1960, %v1998_v26   ;;  %1807 = vmatprep.subr.bf16.mxu1 %v1971_v23  ;;  %v2004_v34 = vpop.eup %2003  ;;  %v859_v22 = vld [vmem:[#allocation2 + $0x50] sm:$0xff] }
 0x146   : > { %897 = vperm.xlu0 %1959, %v2000_v28   ;;  %v2006_v37 = vpop.eup %2005  ;;  %v855_v8 = vld [vmem:[#allocation2 + $0x30] sm:$0xff] }
 0x147   : > { %1838 = vmatpush3.bf16.msra.mxu0 %v1970_v19  ;;  %v2008_v38 = vpop.eup %2007  ;;  %v853_v1 = vld [vmem:[#allocation2 + $0x20] sm:$0xff] }
 0x148   : > { %1839 = vmatprep.subr.bf16.mxu0 %v1972_v29  ;;  %1808 = vmatpush3.bf16.msra.mxu1 %v1971_v23  ;;  %v856_v7 = vld [vmem:[#allocation2 + $0x38] sm:$0xff] }
 0x149   : > { %912 = vperm.xlu1 %1960, %v2002_v33   ;;  %1809 = vmatprep.subr.bf16.mxu1 %v1973_v32  ;;  %v854_v63 = vld [vmem:[#allocation2 + $0x28] sm:$0xff] }
 0x14a   : > { %907 = vperm.xlu0 %1959, %v2004_v34   ;;  %v2010_v40 = vpop.eup %2009  ;;  %v862_v28 = vld [vmem:[#allocation2 + $0x68] sm:$0xff] }
 0x14b   : > { %1840 = vmatpush3.bf16.msra.mxu0 %v1972_v29  ;;  %v2012_v41 = vpop.eup %2011  ;;  %v861_v29 = vld [vmem:[#allocation2 + $0x60] sm:$0xff] }
 0x14c   : > { %1841 = vmatprep.subr.bf16.mxu0 %v1974_v35  ;;  %1810 = vmatpush3.bf16.msra.mxu1 %v1973_v32 }
 0x14d   : > { %922 = vperm.xlu1 %1960, %v2006_v37   ;;  %1811 = vmatprep.subr.bf16.mxu1 %v1975_v36  ;;  %v2014_v44 = vpop.eup %2013 }
 0x14e   : > { %917 = vperm.xlu0 %1959, %v2008_v38   ;;  %v2016_v45 = vpop.eup %2015 }
 0x14f   : > { %1842 = vmatpush3.bf16.msra.mxu0 %v1974_v35  ;;  %v864_v35 = vld [vmem:[#allocation2 + $0x78] sm:$0xff] }
 0x150   : > { %1843 = vmatprep.subr.bf16.mxu0 %v1977_v39  ;;  %1812 = vmatpush3.bf16.msra.mxu1 %v1975_v36  ;;  %v863_v36 = vld [vmem:[#allocation2 + $0x70] sm:$0xff] }
 0x151   : > { %932 = vperm.xlu1 %1960, %v2010_v40  }
 0x152   : > { %927 = vperm.xlu0 %1959, %v2012_v41  }
 0x153   : > { %1844 = vmatpush3.bf16.msra.mxu0 %v1977_v39  ;;  %1814 = vmatmul.mubr.bf16.vlgmr.msra.gmra.mrb[0].mxu1 %v1978_v42 }
 0x154   : > { %1817 = vmatprep.mubr.bf16.mxu1 %v1979_v43 }
 0x155   : > { %942 = vperm.xlu1 %1960, %v2014_v44  }
 0x156   : > { %937 = vperm.xlu0 %1959, %v2016_v45  }
 0x15b   : > { %1818 = vmatmul.mubr.bf16.gmra.mrb[4].mxu1 %v1980_v46 }
 0x15c   : > { %1821 = vmatprep.mubr.bf16.mxu1 %v1981_v47 }
 0x163   : > { %1822 = vmatmul.mubr.bf16.gmra.mrb[8].mxu1 %v1982_v48 }
 0x164   : > { %1825 = vmatprep.mubr.bf16.mxu1 %v1983_v49 }
 0x16b   : > { %1826 = vmatmul.mubr.bf16.gmra.mrb[12].mxu1 %v1984_v50 }
 0x1b8   : > { %v878_v51 = vpop.permute.xlu1 %877 }
 0x1b9   : > { %v868_v52 = vpop.permute.xlu0 %867  ;;  %v947_v58 = vmul.f32 %v878_v51, %v851_v53 }
 0x1ba   : > { %v945_v61 = vmul.f32 %v868_v52, %v849_v55 }
 0x1bc   : > { %v883_v57 = vpop.permute.xlu1 %882 }
 0x1bd   : > { %v948_v59 = vmul.f32 %v883_v57, %v852_v54  ;;  %v873_v60 = vpop.permute.xlu0 %872 }
 0x1be   : > { %v946_v62 = vmul.f32 %v873_v60, %v850_v56  ;;  %v2365_v60 = vld [vmem:[%s2422_s6] ss:$0 sm:$0xff] }
 0x1bf   : > { %v962_v0 = vpack.c.bf16 %v948_v59, %v947_v58 }
 0x1c0   : > { %v893_v2 = vpop.permute.xlu1 %892  ;;  %v961_v3 = vpack.c.bf16 %v946_v62, %v945_v61 }
 0x1c1   : > { %v950_v4 = vmul.f32 %v893_v2, %v854_v63  ;;  %v888_v5 = vpop.permute.xlu0 %887 }
 0x1c2   : > { %v949_v6 = vmul.f32 %v888_v5, %v853_v1  ;;  %1845 = vmatprep.mubr.bf16.mxu0 %v961_v3 }
 0x1c3   : > { %1846 = vmatmul.mubr.bf16.vlgmr.msra.gmra.mrb[0].mxu0 %v962_v0 }
 0x1c4   : > { %v963_v9 = vpack.c.bf16 %v950_v4, %v949_v6  ;;  %v903_v10 = vpop.permute.xlu1 %902 }
 0x1c5   : > { %v952_v11 = vmul.f32 %v903_v10, %v856_v7  ;;  %v898_v12 = vpop.permute.xlu0 %897 }
 0x1c6   : > { %v951_v14 = vmul.f32 %v898_v12, %v855_v8  ;;  %1849 = vmatprep.mubr.bf16.mxu0 %v963_v9 }
 0x1c8   : > { %v964_v17 = vpack.c.bf16 %v952_v11, %v951_v14  ;;  %v913_v13 = vpop.permute.xlu1 %912 }
 0x1c9   : > { %v954_v18 = vmul.f32 %v913_v13, %v858_v15  ;;  %v908_v20 = vpop.permute.xlu0 %907 }
 0x1ca   : > { %v953_v19 = vmul.f32 %v908_v20, %v857_v16 }
 0x1cb   : > { %1850 = vmatmul.mubr.bf16.gmra.mrb[4].mxu0 %v964_v17 }
 0x1cc   : > { %v965_v23 = vpack.c.bf16 %v954_v18, %v953_v19  ;;  %v923_v24 = vpop.permute.xlu1 %922 }
 0x1cd   : > { %v956_v25 = vmul.f32 %v923_v24, %v860_v21  ;;  %v918_v26 = vpop.permute.xlu0 %917 }
 0x1ce   : > { %v955_v27 = vmul.f32 %v918_v26, %v859_v22  ;;  %1853 = vmatprep.mubr.bf16.mxu0 %v965_v23 }
 0x1d0   : > { %v966_v30 = vpack.c.bf16 %v956_v25, %v955_v27  ;;  %v933_v31 = vpop.permute.xlu1 %932 }
 0x1d1   : > { %v958_v32 = vmul.f32 %v933_v31, %v862_v28  ;;  %v928_v33 = vpop.permute.xlu0 %927 }
 0x1d2   : > { %v957_v34 = vmul.f32 %v928_v33, %v861_v29 }
 0x1d3   : > { %1854 = vmatmul.mubr.bf16.gmra.mrb[8].mxu0 %v966_v30 }
 0x1d4   : > { %v967_v37 = vpack.c.bf16 %v958_v32, %v957_v34  ;;  %v943_v38 = vpop.permute.xlu1 %942 }
 0x1d5   : > { %v960_v39 = vmul.f32 %v943_v38, %v864_v35  ;;  %v938_v40 = vpop.permute.xlu0 %937 }
 0x1d6   : > { %v959_v41 = vmul.f32 %v938_v40, %v863_v36  ;;  %1857 = vmatprep.mubr.bf16.mxu0 %v967_v37 }
 0x1d8   : > { %v968_v42 = vpack.c.bf16 %v960_v39, %v959_v41 }
 0x1db   : > { %1858 = vmatmul.mubr.bf16.gmra.mrb[12].mxu0 %v968_v42 }
 0x226   : > { %v1815_v43 = vpop.f32.mrb[0].mxu1 }
 0x227   : > { %v1147_v44 = vpop.f32.mrb[1].mxu1 }
 0x228   : > { %v1816_v45 = vpop.f32.mrb[2].mxu1 }
 0x229   : > { %v1150_v46 = vpop.f32.mrb[3].mxu1 }
 0x22e   : > { %v1819_v47 = vpop.f32.mrb[4].mxu1 }
 0x22f   : > { %v1163_v48 = vpop.f32.mrb[5].mxu1 }
 0x230   : > { %v1820_v49 = vpop.f32.mrb[6].mxu1 }
 0x231   : > { %v1166_v50 = vpop.f32.mrb[7].mxu1 }
 0x236   : > { %v1823_v51 = vpop.f32.mrb[8].mxu1 }
 0x237   : > { %v1179_v52 = vpop.f32.mrb[9].mxu1 }
 0x238   : > { %v1824_v53 = vpop.f32.mrb[10].mxu1 }
 0x239   : > { %v1182_v54 = vpop.f32.mrb[11].mxu1 }
 0x23e   : > { %v2354_v55 = vpop.f32.mrb[12].mxu1 }
 0x23f   : > { %v2356_v56 = vpop.f32.mrb[13].mxu1 }
 0x240   : > { %v2358_v57 = vpop.f32.mrb[14].mxu1 }
 0x241   : > { %v2360_v58 = vpop.f32.mrb[15].mxu1 }
 0x296   : > { %v1847_v59 = vpop.f32.mrb[0].mxu0 }
 0x297   : > { %v1301_v61 = vadd.f32 %v1847_v59, %v1815_v43  ;;  %v1292_v62 = vpop.f32.mrb[1].mxu0 }
 0x298   : > { %v1293_v63 = vadd.f32 %v1292_v62, %v1147_v44  ;;  %v1848_v0 = vpop.f32.mrb[2].mxu0 }
 0x299   : > { %v1364_v1 = vadd.f32 %v2365_v60, %v1301_v61  ;;  %v1304_v2 = vadd.f32 %v1848_v0, %v1816_v45  ;;  %v1295_v3 = vpop.f32.mrb[3].mxu0 }
 0x29a   : > { %v1362_v4 = vadd.f32 %v2365_v60, %v1293_v63  ;;  %v1296_v5 = vadd.f32 %v1295_v3, %v1150_v46 }
 0x29b   : > { %v1365_v6 = vadd.f32 %v2365_v60, %v1304_v2  ;;  %v1380_v8 = vmax.f32 %v1364_v1, 0.0 }
 0x29c   : > { %v1363_v7 = vadd.f32 %v2365_v60, %v1296_v5  ;;  %v1378_v10 = vmax.f32 %v1362_v4, 0.0 }
 0x29d   : > { %v1381_v9 = vmax.f32 %v1365_v6, 0.0 }
 0x29e   : > { %v1379_v11 = vmax.f32 %v1363_v7, 0.0  ;;  %v1851_v12 = vpop.f32.mrb[4].mxu0 }
 0x29f   : > { %v1678_v14 = vpack.c.bf16 %v1381_v9, %v1380_v8  ;;  %v1317_v15 = vadd.f32 %v1851_v12, %v1819_v47  ;;  %v1308_v16 = vpop.f32.mrb[5].mxu0 }
 0x2a0   : > { %v1673_v17 = vpack.c.bf16 %v1379_v11, %v1378_v10  ;;  %v1309_v13 = vadd.f32 %v1308_v16, %v1163_v48  ;;  %v1852_v18 = vpop.f32.mrb[6].mxu0 }
 0x2a1   : > { %1710 = vst [vmem:[%s2201_s15 + $0x8] sm:$0xff] %v1678_v14   ;;  %v1368_v20 = vadd.f32 %v2365_v60, %v1317_v15  ;;  %v1320_v19 = vadd.f32 %v1852_v18, %v1820_v49  ;;  %v1311_v21 = vpop.f32.mrb[7].mxu0 }
 0x2a2   : > { %1674 = vst [vmem:[%s2201_s15] sm:$0xff] %v1673_v17   ;;  %v1366_v22 = vadd.f32 %v2365_v60, %v1309_v13  ;;  %v1312_v23 = vadd.f32 %v1311_v21, %v1166_v50 }
 0x2a3   : > { %v1369_v24 = vadd.f32 %v2365_v60, %v1320_v19  ;;  %v1384_v26 = vmax.f32 %v1368_v20, 0.0 }
 0x2a4   : > { %v1367_v25 = vadd.f32 %v2365_v60, %v1312_v23  ;;  %v1382_v28 = vmax.f32 %v1366_v22, 0.0 }
 0x2a5   : > { %v1385_v27 = vmax.f32 %v1369_v24, 0.0 }
 0x2a6   : > { %v1383_v29 = vmax.f32 %v1367_v25, 0.0  ;;  %v1855_v30 = vpop.f32.mrb[8].mxu0 }
 0x2a7   : > { %v1688_v31 = vpack.c.bf16 %v1385_v27, %v1384_v26  ;;  %v1333_v32 = vadd.f32 %v1855_v30, %v1823_v51  ;;  %v1324_v33 = vpop.f32.mrb[9].mxu0 }
 0x2a8   : > { %v1683_v34 = vpack.c.bf16 %v1383_v29, %v1382_v28  ;;  %v1325_v35 = vadd.f32 %v1324_v33, %v1179_v52  ;;  %v1856_v36 = vpop.f32.mrb[10].mxu0 }
 0x2a9   : > { %1712 = vst [vmem:[%s2201_s15 + $0x18] sm:$0xff] %v1688_v31   ;;  %v1372_v37 = vadd.f32 %v2365_v60, %v1333_v32  ;;  %v1336_v38 = vadd.f32 %v1856_v36, %v1824_v53  ;;  %v1327_v39 = vpop.f32.mrb[11].mxu0 }
 0x2aa   : > { %1711 = vst [vmem:[%s2201_s15 + $0x10] sm:$0xff] %v1683_v34   ;;  %v1370_v40 = vadd.f32 %v2365_v60, %v1325_v35  ;;  %v1328_v41 = vadd.f32 %v1327_v39, %v1182_v54 }
 0x2ab   : > { %v1373_v42 = vadd.f32 %v2365_v60, %v1336_v38  ;;  %v1388_v44 = vmax.f32 %v1372_v37, 0.0 }
 0x2ac   : > { %v1371_v43 = vadd.f32 %v2365_v60, %v1328_v41  ;;  %v1386_v46 = vmax.f32 %v1370_v40, 0.0 }
 0x2ad   : > { %v1389_v45 = vmax.f32 %v1373_v42, 0.0 }
 0x2ae   : > { %v1387_v47 = vmax.f32 %v1371_v43, 0.0  ;;  %v1859_v48 = vpop.f32.mrb[12].mxu0 }
 0x2af   : > { %v1698_v49 = vpack.c.bf16 %v1389_v45, %v1388_v44  ;;  %v1349_v50 = vadd.f32 %v1859_v48, %v2354_v55  ;;  %v1340_v51 = vpop.f32.mrb[13].mxu0 }
 0x2b0   : > { %v1693_v52 = vpack.c.bf16 %v1387_v47, %v1386_v46  ;;  %v1341_v53 = vadd.f32 %v1340_v51, %v2356_v56  ;;  %v1860_v59 = vpop.f32.mrb[14].mxu0 }
 0x2b1   : > { %1714 = vst [vmem:[%s2201_s15 + $0x28] sm:$0xff] %v1698_v49   ;;  %v1376_v54 = vadd.f32 %v2365_v60, %v1349_v50  ;;  %v1352_v61 = vadd.f32 %v1860_v59, %v2358_v57  ;;  %v1343_v62 = vpop.f32.mrb[15].mxu0 }
 0x2b2   : > { %1713 = vst [vmem:[%s2201_s15 + $0x20] sm:$0xff] %v1693_v52   ;;  %v1374_v63 = vadd.f32 %v2365_v60, %v1341_v53  ;;  %v1344_v0 = vadd.f32 %v1343_v62, %v2360_v58 }
 0x2b3   : > { %v1377_v55 = vadd.f32 %v2365_v60, %v1352_v61  ;;  %v1392_v2 = vmax.f32 %v1376_v54, 0.0 }
 0x2b4   : > { %v1375_v1 = vadd.f32 %v2365_v60, %v1344_v0  ;;  %v1390_v3 = vmax.f32 %v1374_v63, 0.0 }
 0x2b5   : > { %v1393_v56 = vmax.f32 %v1377_v55, 0.0 }
 0x2b6   : > { %v1391_v4 = vmax.f32 %v1375_v1, 0.0 }
 0x2b7   : > { %v1708_v5 = vpack.c.bf16 %v1393_v56, %v1392_v2 }
 0x2b8   : > { %v1703_v6 = vpack.c.bf16 %v1391_v4, %v1390_v3 }
 0x2b9   : > { %1716 = vst [vmem:[%s2201_s15 + $0x38] sm:$0xff] %v1708_v5  }
 0x2ba   : > { %1715 = vst [vmem:[%s2201_s15 + $0x30] sm:$0xff] %v1703_v6  }
 0x2bb PF: > { %s17_s30 = sadd.s32 1, %s2071_s30   ;;  %s2430_s9 = sld [smem:[#allocation5_spill]] }
 0x2bc   : > { %p14_p1 = scmp.ge.s32.totalorder %s17_s30, 6   ;;  %s2431_s11 = sld [smem:[#allocation6_spill]] }
 0x2bd   : > { %s2432_s24 = smov %s2051_s25  ;;  %s2433_s25 = smov %s2166_s14 }
 0x2be   : > { %s2434_s26 = smov %s2063_s28  ;;  %s2435_s27 = smov %s2067_s29 }
 0x2bf   :  { %16 = sbr.rel (!%p14_p1) target bundleno = 6 (0x6), region = 138 }
 0x2c1   : > { %s2436_s28 = smov %s2430_s9 }
 0x2c2   : > { %s2437_s29 = smov %s2431_s11 }

// kernel: gnn_forward.7
= control target key start
LH: loop header
LB: loop body
LE: loop exit
PB: predicated region body
PF: predicated region fallthrough
CT: control target
= control target key end

     0   :  { %s1645_s21 = smov 0   ;;  %s1875_s0 = inlined_call_operand.vmem [shape: bf16[8,256], index: 0, kind: input, shape index: {}]   ;;  %s1876_s1 = inlined_call_operand.vmem [shape: bf16[256,128], index: 1, kind: input, shape index: {}]   ;;  %s1877_s2 = inlined_call_operand.vmem [shape: bf16[8,256], index: 2, kind: input, shape index: {}]   ;;  %s1878_s3 = inlined_call_operand.vmem [shape: bf16[256,128], index: 3, kind: input, shape index: {}]   ;;  %s1879_s4 = inlined_call_operand.vmem [shape: bf16[8,256], index: 4, kind: input, shape index: {}]   ;;  %s1880_s5 = inlined_call_operand.vmem [shape: bf16[256,128], index: 5, kind: input, shape index: {}]   ;;  %s1881_s6 = inlined_call_operand.vmem [shape: bf16[128,128], index: 6, kind: input, shape index: {}]   ;;  %s1882_s7 = inlined_call_operand.vmem [shape: f32[1,128], index: 7, kind: input, shape index: {}]   ;;  %s1883_s8 = inlined_call_operand.vmem [shape: bf16[128,128], index: 8, kind: input, shape index: {}]   ;;  %s1884_s9 = inlined_call_operand.vmem [shape: f32[1,128], index: 9, kind: input, shape index: {}]   ;;  %s1885_s10 = inlined_call_operand.vmem [shape: bf16[128,128], index: 10, kind: input, shape index: {}]   ;;  %s1886_s11 = inlined_call_operand.vmem [shape: f32[1,128], index: 11, kind: input, shape index: {}]   ;;  %s1887_s12 = inlined_call_operand.vmem [shape: f32[8,128], index: 12, kind: output, shape index: {}]  }
   0x1 LB: > { %1889 = sst [smem:[#allocation3_spill]] %s1573_s21  ;;  %s1651_s22 = sadd.s32 4294967295, %s1573_s21   ;;  %s1573_s21 = sphi %s1645_s21, %s22_s21  }
   0x2   : > { %p1262_p0 = scmp.ge.s32.totalorder %s1573_s21, 1  ;;  %p407_p1 = scmp.lt.s32.totalorder %s1573_s21, 3 }
   0x4   : > { %p408_p2 = pnand %p1262_p0, %p407_p1 }
   0x5   : > { %p466_p3 = scmp.lt.s32.totalorder (!%p408_p2), %s1651_s22, 1  ;;  %s1264_s23 = sshll.u32 (!%p408_p2), %s1651_s22, 4 }
   0x6   : > { %411 = sbr.rel (%p408_p2) target bundleno = 989 (0x3dd), region = 68  ;;  %p471_p4 = scmp.lt.s32.totalorder (!%p408_p2), %s1264_s23, 31 }
   0x7   : > { %p1272_p5 = scmp.ne.s32.totalorder (!%p408_p2), %s1651_s22, 0 }
   0xd   : > { %s467_s24 = scalar_select %p466_p3, %s1651_s22, 1 }
   0xe   : > { %s1893_s23 = smov (!%p471_p4, %s1264_s23), 31  ;;  %500 = sbr.rel (%p1272_p5) target bundleno = 21 (0x15), region = 72 }
   0xf   : > { %s1658_s25 = sshll.u32 %s467_s24, 2  ;;  %s1265_s29 = sshll.u32 %s1893_s23, 2  ;;  %v1575_v0 = vmov (!%p1272_p5), 0.0  }
  0x10   : > { %s1667_s14 = scalar_lea.vmem %s1876_s1, %s1265_s29  ;;  %s479_s17 = scalar_lea.vmem %s1877_s2, %s1658_s25  ;;  %501 = vst [vmem:[#allocation2] sm:$0xff] (!%p1272_p5), %v1575_v0 }
  0x11   : > { %s1676_s20 = scalar_lea.vmem %s1878_s3, %s1265_s29  ;;  %s489_s27 = scalar_lea.vmem %s1879_s4, %s1658_s25 }
  0x12   : > { %s1685_s21 = scalar_lea.vmem %s1880_s5, %s1265_s29 }
  0x15 PF: > { %v1515_v1 = vld [vmem:[%s1676_s20] sm:$0xff]   ;;  %v1576_v2 = vmov 0.0   ;;  %v1517_v4 = vld [vmem:[%s1676_s20 + $0x8] sm:$0xff]   ;;  %vm1577_vm0 = vmmov 0   ;;  %v1519_v6 = vld [vmem:[%s1676_s20 + $0x10] sm:$0xff]   ;;  %s1890_s15 = scalar_lea.vmem %s1875_s0, %s1658_s25  ;;  %p1297_p6 = scmp.ne.s32.totalorder %s1651_s22, 1 }
  0x16   : > { %1382 = vmatprep.subr.bf16.mxu0 %v1576_v2  ;;  %1402 = vmatprep.subr.bf16.mxu1 %v1576_v2  ;;  %v1516_v3 = vld [vmem:[%s1667_s14] sm:$0xff]   ;;  %v1518_v5 = vld [vmem:[%s1667_s14 + $0x8] sm:$0xff]   ;;  %v1520_v7 = vld [vmem:[%s1667_s14 + $0x10] sm:$0xff]   ;;  %v1578_v46 = vmov (!%p1297_p6), 0.0   ;;  %vm1579_vm1 = vmmov (!%p1297_p6), 0  }
  0x17   : > { %1383 = vmatpush3.bf16.msra.mxu0 %v1515_v1  ;;  %1398 = vmatprep.mubr.msk.bf16.mxu0 %vm1577_vm0, %v1576_v2  ;;  %v1521_v8 = vld [vmem:[%s1676_s20 + $0x18] sm:$0xff]   ;;  %v1523_v10 = vld [vmem:[%s1676_s20 + $0x20] sm:$0xff]   ;;  %v1525_v12 = vld [vmem:[%s1676_s20 + $0x28] sm:$0xff]  }
  0x18   : > { %1403 = vmatpush3.bf16.msra.mxu1 %v1516_v3  ;;  %1384 = vmatprep.subr.bf16.mxu0 %v1576_v2  ;;  %v1522_v9 = vld [vmem:[%s1667_s14 + $0x18] sm:$0xff]   ;;  %v1524_v11 = vld [vmem:[%s1667_s14 + $0x20] sm:$0xff]   ;;  %v1526_v13 = vld [vmem:[%s1667_s14 + $0x28] sm:$0xff]  }
  0x19   : > { %1404 = vmatprep.subr.bf16.mxu1 %v1576_v2  ;;  %1418 = vmatprep.mubr.msk.bf16.mxu1 %vm1577_vm0, %v1576_v2  ;;  %v1527_v14 = vld [vmem:[%s1676_s20 + $0x30] sm:$0xff]   ;;  %v1529_v16 = vld [vmem:[%s1676_s20 + $0x38] sm:$0xff]   ;;  %v519_v18 = vld [vmem:[%s479_s17] sm:$0xf] }
  0x1a   : > { %v1528_v15 = vld [vmem:[%s1667_s14 + $0x30] sm:$0xff]   ;;  %v1530_v17 = vld [vmem:[%s1667_s14 + $0x38] sm:$0xff]   ;;  %v1531_v19 = vld [vmem:[%s1685_s21] sm:$0xff]  }
  0x1b   : > { %1385 = vmatpush3.bf16.msra.mxu0 %v1517_v4  ;;  %v502_v20 = vld [vmem:[%s1890_s15] sm:$0xf]  ;;  %v1532_v21 = vld [vmem:[%s1685_s21 + $0x8] sm:$0xff]   ;;  %v1533_v22 = vld [vmem:[%s1685_s21 + $0x10] sm:$0xff]  }
  0x1c   : > { %1405 = vmatpush3.bf16.msra.mxu1 %v1518_v5  ;;  %1386 = vmatprep.subr.bf16.mxu0 %v1576_v2  ;;  %v1534_v23 = vld [vmem:[%s1685_s21 + $0x18] sm:$0xff]   ;;  %v1535_v24 = vld [vmem:[%s1685_s21 + $0x20] sm:$0xff]   ;;  %v1536_v25 = vld [vmem:[%s1685_s21 + $0x28] sm:$0xff]  }
  0x1d   : > { %1406 = vmatprep.subr.bf16.mxu1 %v1576_v2  ;;  %v1537_v26 = vld [vmem:[%s1685_s21 + $0x30] sm:$0xff]   ;;  %v1538_v27 = vld [vmem:[%s1685_s21 + $0x38] sm:$0xff]   ;;  %v712_v28 = vld [vmem:[%s489_s27] sm:$0xf] }
  0x1e   : > { %v818_v39 = vld [vmem:[#allocation2] sm:$0xff]  ;;  %v1539_v45 = vld [vmem:[%s1881_s6] sm:$0xff] (!%p1297_p6)   ;;  %v1541_v48 = vld [vmem:[%s1881_s6 + $0x10] sm:$0xff] (!%p1297_p6)  }
  0x1f   : > { %1387 = vmatpush3.bf16.msra.mxu0 %v1519_v6  ;;  %v1540_v47 = vld [vmem:[%s1881_s6 + $0x8] sm:$0xff] (!%p1297_p6)   ;;  %v1547_v49 = vld [vmem:[%s1883_s8] sm:$0xff] (!%p1297_p6)   ;;  %v1542_v50 = vld [vmem:[%s1881_s6 + $0x18] sm:$0xff] (!%p1297_p6)  }
  0x20   : > { %1407 = vmatpush3.bf16.msra.mxu1 %v1520_v7  ;;  %1388 = vmatprep.subr.bf16.mxu0 %v1576_v2  ;;  %v1548_v51 = vld [vmem:[%s1883_s8 + $0x8] sm:$0xff] (!%p1297_p6)   ;;  %v1543_v52 = vld [vmem:[%s1881_s6 + $0x20] sm:$0xff] (!%p1297_p6)   ;;  %v1549_v53 = vld [vmem:[%s1883_s8 + $0x10] sm:$0xff] (!%p1297_p6)  }
  0x21   : > { %1408 = vmatprep.subr.bf16.mxu1 %v1576_v2  ;;  %v1544_v54 = vld [vmem:[%s1881_s6 + $0x28] sm:$0xff] (!%p1297_p6)   ;;  %v1550_v55 = vld [vmem:[%s1883_s8 + $0x18] sm:$0xff] (!%p1297_p6)   ;;  %v1545_v56 = vld [vmem:[%s1881_s6 + $0x30] sm:$0xff] (!%p1297_p6)  }
  0x22   : > { %v1551_v57 = vld [vmem:[%s1883_s8 + $0x20] sm:$0xff] (!%p1297_p6)   ;;  %v1546_v58 = vld [vmem:[%s1881_s6 + $0x38] sm:$0xff] (!%p1297_p6)   ;;  %v1552_v60 = vld [vmem:[%s1883_s8 + $0x28] sm:$0xff] (!%p1297_p6)  }
  0x23   : > { %1389 = vmatpush3.bf16.msra.mxu0 %v1521_v8  ;;  %v1553_v62 = vld [vmem:[%s1883_s8 + $0x30] sm:$0xff] (!%p1297_p6)   ;;  %v1554_v63 = vld [vmem:[%s1883_s8 + $0x38] sm:$0xff] (!%p1297_p6)   ;;  %v1555_v0 = vld [vmem:[%s1885_s10] sm:$0xff] (!%p1297_p6)  }
  0x24   : > { %1409 = vmatpush3.bf16.msra.mxu1 %v1522_v9  ;;  %1390 = vmatprep.subr.bf16.mxu0 %v1576_v2  ;;  %v1556_v1 = vld [vmem:[%s1885_s10 + $0x8] sm:$0xff] (!%p1297_p6)   ;;  %v1558_v3 = vld [vmem:[%s1885_s10 + $0x18] sm:$0xff] (!%p1297_p6)   ;;  %v1559_v4 = vld [vmem:[%s1885_s10 + $0x20] sm:$0xff] (!%p1297_p6)  }
  0x25   : > { %1410 = vmatprep.subr.bf16.mxu1 %v1576_v2  ;;  %v1560_v5 = vld [vmem:[%s1885_s10 + $0x28] sm:$0xff] (!%p1297_p6)   ;;  %v1298_v6 = vld [vmem:[%s1882_s7] ss:$0 sm:$0xff] (!%p1297_p6) }
  0x27   : > { %1391 = vmatpush3.bf16.msra.mxu0 %v1523_v10 }
  0x28   : > { %1411 = vmatpush3.bf16.msra.mxu1 %v1524_v11  ;;  %1392 = vmatprep.subr.bf16.mxu0 %v1576_v2 }
  0x29   : > { %1412 = vmatprep.subr.bf16.mxu1 %v1576_v2 }
  0x2b   : > { %1393 = vmatpush3.bf16.msra.mxu0 %v1525_v12 }
  0x2c   : > { %1413 = vmatpush3.bf16.msra.mxu1 %v1526_v13  ;;  %1394 = vmatprep.subr.bf16.mxu0 %v1576_v2 }
  0x2d   : > { %1414 = vmatprep.subr.bf16.mxu1 %v1576_v2 }
  0x2f   : > { %1395 = vmatpush3.bf16.msra.mxu0 %v1527_v14  ;;  %v1561_v14 = vld [vmem:[%s1885_s10 + $0x30] sm:$0xff] (!%p1297_p6)  }
  0x30   : > { %1415 = vmatpush3.bf16.msra.mxu1 %v1528_v15  ;;  %1396 = vmatprep.subr.bf16.mxu0 %v1576_v2  ;;  %v1562_v15 = vld [vmem:[%s1885_s10 + $0x38] sm:$0xff] (!%p1297_p6)  }
  0x31   : > { %1416 = vmatprep.subr.bf16.mxu1 %v1576_v2 }
  0x33   : > { %1397 = vmatpush3.bf16.msra.mxu0 %v1529_v16  ;;  %v1307_v16 = vld [vmem:[%s1884_s9] ss:$0 sm:$0xff] (!%p1297_p6) }
  0x34   : > { %1417 = vmatpush3.bf16.msra.mxu1 %v1530_v17  ;;  %1422 = vmatprep.subr.bf16.mxu0 %v1576_v2 }
  0x35   : > { %1462 = vmatprep.subr.bf16.mxu1 (!%p1297_p6), %v1578_v46 }
  0x36   : > { %1399 = vmatmul.mubr.bf16.vlgmr.msra.gmra.mrb[0].mxu0 %v519_v18 }
  0x37   : > { %1419 = vmatmul.mubr.bf16.vlgmr.msra.gmra.mrb[0].mxu1 %v502_v20  ;;  %1423 = vmatpush3.bf16.msra.mxu0 %v1531_v19 }
  0x38   : > { %1424 = vmatprep.subr.bf16.mxu0 %v1576_v2  ;;  %1438 = vmatprep.mubr.msk.bf16.mxu0 %vm1577_vm0, %v1576_v2 }
  0x39   : > { %1478 = vmatprep.mubr.msk.bf16.mxu1 (!%p1297_p6), %vm1579_vm1, %v1578_v46  ;;  %1463 = vmatpush3.bf16.msra.mxu1 (!%p1297_p6), %v1547_v49 }
  0x3a   : > { %1464 = vmatprep.subr.bf16.mxu1 (!%p1297_p6), %v1578_v46 }
  0x3b   : > { %1425 = vmatpush3.bf16.msra.mxu0 %v1532_v21 }
  0x3c   : > { %1426 = vmatprep.subr.bf16.mxu0 %v1576_v2 }
  0x3d   : > { %1465 = vmatpush3.bf16.msra.mxu1 (!%p1297_p6), %v1548_v51 }
  0x3e   : > { %1466 = vmatprep.subr.bf16.mxu1 (!%p1297_p6), %v1578_v46 }
  0x3f   : > { %1427 = vmatpush3.bf16.msra.mxu0 %v1533_v22 }
  0x40   : > { %1428 = vmatprep.subr.bf16.mxu0 %v1576_v2 }
  0x41   : > { %1467 = vmatpush3.bf16.msra.mxu1 (!%p1297_p6), %v1549_v53 }
  0x42   : > { %1468 = vmatprep.subr.bf16.mxu1 (!%p1297_p6), %v1578_v46 }
  0x43   : > { %1429 = vmatpush3.bf16.msra.mxu0 %v1534_v23 }
  0x44   : > { %1430 = vmatprep.subr.bf16.mxu0 %v1576_v2 }
  0x45   : > { %1469 = vmatpush3.bf16.msra.mxu1 (!%p1297_p6), %v1550_v55 }
  0x46   : > { %1470 = vmatprep.subr.bf16.mxu1 (!%p1297_p6), %v1578_v46 }
  0x47   : > { %1431 = vmatpush3.bf16.msra.mxu0 %v1535_v24  ;;  %v1316_v24 = vld [vmem:[%s1886_s11] ss:$0 sm:$0xff] (!%p1297_p6) }
  0x48   : > { %1432 = vmatprep.subr.bf16.mxu0 %v1576_v2 }
  0x49   : > { %1471 = vmatpush3.bf16.msra.mxu1 (!%p1297_p6), %v1551_v57 }
  0x4a   : > { %1472 = vmatprep.subr.bf16.mxu1 (!%p1297_p6), %v1578_v46 }
  0x4b   : > { %1433 = vmatpush3.bf16.msra.mxu0 %v1536_v25 }
  0x4c   : > { %1434 = vmatprep.subr.bf16.mxu0 %v1576_v2 }
  0x4d   : > { %1473 = vmatpush3.bf16.msra.mxu1 (!%p1297_p6), %v1552_v60 }
  0x4e   : > { %1474 = vmatprep.subr.bf16.mxu1 (!%p1297_p6), %v1578_v46 }
  0x4f   : > { %1435 = vmatpush3.bf16.msra.mxu0 %v1537_v26 }
  0x50   : > { %1436 = vmatprep.subr.bf16.mxu0 %v1576_v2  ;;  %v1557_v2 = vld [vmem:[%s1885_s10 + $0x10] sm:$0xff] (!%p1297_p6)  }
  0x51   : > { %1475 = vmatpush3.bf16.msra.mxu1 (!%p1297_p6), %v1553_v62 }
  0x52   : > { %1476 = vmatprep.subr.bf16.mxu1 (!%p1297_p6), %v1578_v46 }
  0x53   : > { %1437 = vmatpush3.bf16.msra.mxu0 %v1538_v27 }
  0x54   : > { %1442 = vmatprep.subr.bf16.mxu0 (!%p1297_p6), %v1578_v46 }
  0x55   : > { %1477 = vmatpush3.bf16.msra.mxu1 (!%p1297_p6), %v1554_v63 }
  0x56   : > { %1439 = vmatmul.mubr.bf16.vlgmr.msra.gmra.mrb[4].mxu0 %v712_v28 }
  0x57   : > { %1443 = vmatpush3.bf16.msra.mxu0 (!%p1297_p6), %v1539_v45  ;;  %1458 = vmatprep.mubr.msk.bf16.mxu0 (!%p1297_p6), %vm1579_vm1, %v1578_v46 }
  0x58   : > { %1444 = vmatprep.subr.bf16.mxu0 (!%p1297_p6), %v1578_v46 }
  0x5b   : > { %1445 = vmatpush3.bf16.msra.mxu0 (!%p1297_p6), %v1540_v47 }
  0x5c   : > { %1446 = vmatprep.subr.bf16.mxu0 (!%p1297_p6), %v1578_v46 }
  0x5f   : > { %1447 = vmatpush3.bf16.msra.mxu0 (!%p1297_p6), %v1541_v48 }
  0x60   : > { %1448 = vmatprep.subr.bf16.mxu0 (!%p1297_p6), %v1578_v46 }
  0x63   : > { %1449 = vmatpush3.bf16.msra.mxu0 (!%p1297_p6), %v1542_v50 }
  0x64   : > { %1450 = vmatprep.subr.bf16.mxu0 (!%p1297_p6), %v1578_v46 }
  0x67   : > { %1451 = vmatpush3.bf16.msra.mxu0 (!%p1297_p6), %v1543_v52 }
  0x68   : > { %1452 = vmatprep.subr.bf16.mxu0 (!%p1297_p6), %v1578_v46 }
  0x6b   : > { %1453 = vmatpush3.bf16.msra.mxu0 (!%p1297_p6), %v1544_v54 }
  0x6c   : > { %1454 = vmatprep.subr.bf16.mxu0 (!%p1297_p6), %v1578_v46 }
  0x6f   : > { %1455 = vmatpush3.bf16.msra.mxu0 (!%p1297_p6), %v1545_v56 }
  0x70   : > { %1456 = vmatprep.subr.bf16.mxu0 (!%p1297_p6), %v1578_v46 }
  0x73   : > { %1457 = vmatpush3.bf16.msra.mxu0 (!%p1297_p6), %v1546_v58 }
  0x74   : > { %1482 = vmatprep.subr.bf16.mxu0 (!%p1297_p6), %v1578_v46 }
 0x109   : > { %v618_v29 = vpop.f32.mrb[0].mxu0 }
 0x10a   : > { %v1400_v30 = vpop.f32.mrb[1].mxu0  ;;  %v706_v31 = vpop.f32.mrb[0].mxu1 }
 0x10b   : > { %v707_v32 = vadd.f32 %v706_v31, %v618_v29  ;;  %v621_v33 = vpop.f32.mrb[2].mxu0  ;;  %v1420_v34 = vpop.f32.mrb[1].mxu1 }
 0x10c   : > { %v1401_v35 = vpop.f32.mrb[3].mxu0  ;;  %v709_v36 = vpop.f32.mrb[2].mxu1 }
 0x10d   : > { %v1421_v37 = vpop.f32.mrb[3].mxu1 }
 0x128   : > { %824 = sbr.rel (%p1297_p6) target bundleno = 989 (0x3dd), region = 76 }
 0x129   : > { %v811_v38 = vpop.f32.mrb[4].mxu0 }
 0x12a   : > { %v817_v40 = vadd.f32 %v811_v38, %v707_v32  ;;  %v1440_v41 = vpop.f32.mrb[5].mxu0 }
 0x12b   : > { %v814_v42 = vpop.f32.mrb[6].mxu0 }
 0x12c   : > { %v819_v43 = vadd.f32 %v818_v39, %v817_v40  ;;  %v1441_v44 = vpop.f32.mrb[7].mxu0 }
 0x12e   : > { %820 = vst [vmem:[#allocation2] sm:$0xff] %v819_v43 }
 0x135   : > { %v825_v59 = vld [vmem:[#allocation2] sm:$0xff] }
 0x136   : > { %v826_v61 = vpack.c.bf16 %v825_v59, %v825_v59 }
 0x138   : > { %1459 = vmatmul.mubr.bf16.vlgmr.msra.gmra.mrb[0].mxu0 %v826_v61 }
 0x139   : > { %1498 = vmatprep.mubr.msk.bf16.mxu0 %vm1579_vm1, %v1578_v46  ;;  %1483 = vmatpush3.bf16.msra.mxu0 %v1555_v0 }
 0x13a   : > { %1484 = vmatprep.subr.bf16.mxu0 %v1578_v46 }
 0x13d   : > { %1485 = vmatpush3.bf16.msra.mxu0 %v1556_v1 }
 0x13e   : > { %1486 = vmatprep.subr.bf16.mxu0 %v1578_v46 }
 0x141   : > { %1487 = vmatpush3.bf16.msra.mxu0 %v1557_v2 }
 0x142   : > { %1488 = vmatprep.subr.bf16.mxu0 %v1578_v46 }
 0x145   : > { %1489 = vmatpush3.bf16.msra.mxu0 %v1558_v3 }
 0x146   : > { %1490 = vmatprep.subr.bf16.mxu0 %v1578_v46 }
 0x149   : > { %1491 = vmatpush3.bf16.msra.mxu0 %v1559_v4 }
 0x14a   : > { %1492 = vmatprep.subr.bf16.mxu0 %v1578_v46 }
 0x14d   : > { %1493 = vmatpush3.bf16.msra.mxu0 %v1560_v5 }
 0x14e   : > { %1494 = vmatprep.subr.bf16.mxu0 %v1578_v46 }
 0x151   : > { %1495 = vmatpush3.bf16.msra.mxu0 %v1561_v14 }
 0x152   : > { %1496 = vmatprep.subr.bf16.mxu0 %v1578_v46 }
 0x155   : > { %1497 = vmatpush3.bf16.msra.mxu0 %v1562_v15 }
 0x20b   : > { %v932_v7 = vpop.f32.mrb[0].mxu0 }
 0x20c   : > { %v933_v8 = vadd.f32 %v1298_v6, %v932_v7  ;;  %v1460_v9 = vpop.f32.mrb[1].mxu0 }
 0x20d   : > { %v935_v10 = vpop.f32.mrb[2].mxu0 }
 0x20e   : > { %v938_v11 = vmax.f32 %v933_v8, 0.0  ;;  %v1461_v12 = vpop.f32.mrb[3].mxu0 }
 0x210   : > { %v939_v13 = vpack.c.bf16 %v938_v11, %v938_v11 }
 0x212   : > { %1479 = vmatmul.mubr.bf16.vlgmr.msra.gmra.mrb[0].mxu1 %v939_v13 }
 0x2e5   : > { %v1045_v17 = vpop.f32.mrb[0].mxu1 }
 0x2e6   : > { %v1046_v18 = vadd.f32 %v1307_v16, %v1045_v17  ;;  %v1480_v19 = vpop.f32.mrb[1].mxu1 }
 0x2e7   : > { %v1048_v20 = vpop.f32.mrb[2].mxu1 }
 0x2e8   : > { %v1051_v21 = vmax.f32 %v1046_v18, 0.0  ;;  %v1481_v22 = vpop.f32.mrb[3].mxu1 }
 0x2ea   : > { %v1052_v23 = vpack.c.bf16 %v1051_v21, %v1051_v21 }
 0x2ec   : > { %1499 = vmatmul.mubr.bf16.vlgmr.msra.gmra.mrb[4].mxu0 %v1052_v23 }
 0x3bf   : > { %v1158_v25 = vpop.f32.mrb[4].mxu0 }
 0x3c0   : > { %v1159_v26 = vadd.f32 %v1316_v24, %v1158_v25  ;;  %v1500_v27 = vpop.f32.mrb[5].mxu0 }
 0x3c1   : > { %v1161_v28 = vpop.f32.mrb[6].mxu0 }
 0x3c2   : > { %v1325_v29 = vmul.f32 -1.442695, %v1159_v26  ;;  %v1501_v30 = vpop.f32.mrb[7].mxu0 }
 0x3c4   : > { %1563 = vpow2.f32 %v1325_v29 }
 0x3ce   : > { %v1564_v31 = vpop.eup %1563 }
 0x3cf   : > { %v1167_v32 = vadd.f32 1.0, %v1564_v31 }
 0x3d1   : > { %1565 = vrcp.f32 %v1167_v32 }
 0x3db   : > { %v1566_v33 = vpop.eup %1565 }
 0x3dc   : > { %1170 = vst [vmem:[%s1887_s12] sm:$0xff] %v1566_v33 }
 0x3dd PF: > { %s1891_s17 = sld [smem:[#allocation3_spill]] }
 0x3e3   : > { %s22_s21 = sadd.s32 1, %s1891_s17  }
 0x3e4   : > { %p19_p7 = scmp.ge.s32.totalorder %s22_s21, 4  }
 0x3e6   :  { %21 = sbr.rel (!%p19_p7) target bundleno = 1 (0x1), region = 117 }

</bundles_post_ra>
